<compile_context>
chip_gen: v5e
topology: v5e:2x2
jax: 0.10.0
libtpu: 0.0.40
codegen_flags: <defaults>
</compile_context>

<pallas_src>
import functools

import jax
import jax.numpy as jnp
from jax.experimental import pallas as pl
from jax.experimental.pallas import tpu as pltpu


# --------------------------------------------------------------------------
# Fused conv kernel.  For one (image, OC tile, M tile) grid step:
#   out[tm, tn] = relu( im2col(x_rows) @ W_flat[:, tile] + bias )
# bf16 MXU operands ({-1,0,+1} activations are exact), f32 accumulation.
# --------------------------------------------------------------------------
def _bin_conv_kernel(x_ref, w_ref, b_ref, o_ref, *,
                     toh, ow, kh, kw, sh, sw, c, concat_k):
    mi = pl.program_id(2)                       # M-tile index (output-row block)
    tm = toh * ow
    tn = o_ref.shape[-1]
    row0 = pl.multiple_of(mi * (toh * sh), toh * sh)   # first input row needed
    nrows = sh * (toh - 1) + 1                          # contiguous rows per tap-row

    def row_block(di):
        rows = x_ref[pl.ds(row0 + di, nrows), :, :]     # (nrows, WP, C)
        if sh > 1:
            # TODO(synk): pre-split stride phases in the wrapper to avoid the
            # strided value slice for stride>1 layers (VGG11 uses stride=1).
            rows = rows[::sh]                           # (TOH, WP, C)
        return rows

    if concat_k:
        # Small/medium C: build one (TM, KH*KW*C) operand -> single matmul.
        parts = []
        for di in range(kh):                            # static unroll
            rows = row_block(di)
            for dj in range(kw):
                parts.append(rows[:, dj: dj + sw * (ow - 1) + 1: sw, :])
        a = jnp.concatenate(parts, axis=-1).reshape(tm, kh * kw * c)
        acc = jnp.dot(a, w_ref[...], preferred_element_type=jnp.float32)
    else:
        # Large C: K=C already fills the MXU; per-tap matmuls, weights sliced
        # from the flat (KH*KW*C, TN) ref.
        acc = jnp.zeros((tm, tn), jnp.float32)
        for di in range(kh):
            rows = row_block(di)
            for dj in range(kw):
                a = rows[:, dj: dj + sw * (ow - 1) + 1: sw, :].reshape(tm, c)
                w_tap = w_ref[pl.ds((di * kw + dj) * c, c), :]
                acc = acc + jnp.dot(a, w_tap, preferred_element_type=jnp.float32)

    out = jnp.maximum(acc + b_ref[...], 0.0)            # bias (1, TN) broadcast
    o_ref[...] = out.astype(o_ref.dtype)


def _choose_toh(oh, ow, tn, acc_bytes_target=1 << 20):
    """Largest divisor TOH of OH such that the f32 (TOH*OW, TN) accumulator
    stays ~<= acc_bytes_target and the output block is sublane-friendly."""
    max_tm = max(ow, acc_bytes_target // (4 * tn))
    for toh in range(oh, 0, -1):
        if oh % toh:
            continue
        tm = toh * ow
        if tm <= max_tm and (tm % 8 == 0 or toh == oh):
            return toh
    return oh


def _fused_bin_conv(xp, w_flat, bias, *, oh, ow, kh, kw, stride, tn,
                    out_dtype=jnp.float32):
    """xp:(N,HP,WP,C) bf16, w_flat:(KH*KW*C, OCp) bf16, bias:(1,OCp) f32."""
    n, hp, wp, c = xp.shape
    ktot, ocp = w_flat.shape
    assert ktot == kh * kw * c and ocp % tn == 0 and bias.shape == (1, ocp)

    toh = _choose_toh(oh, ow, tn)
    tm = toh * ow
    m_tiles = oh // toh
    concat_k = ktot <= 1024        # concat taps along K only while K is shallow

    kernel = functools.partial(_bin_conv_kernel, toh=toh, ow=ow, kh=kh, kw=kw,
                               sh=stride, sw=stride, c=c, concat_k=concat_k)

    # Rough VMEM footprint estimate (with (8,128)/lane padding) -> scoped limit.
    lane = lambda v: ((v + 127) // 128) * 128
    sub = lambda v: ((v + 7) // 8) * 8
    est = (2 * hp * sub(wp) * lane(c) * 2            # x block, double-buffered
           + 2 * sub(ktot) * tn * 2                  # weight tile
           + 2 * 8 * tn * 4                          # bias tile
           + 2 * sub(tm) * tn * 4                    # out block (f32)
           + sub(tm) * tn * 4                        # accumulator
           + 2 * sub(tm) * lane(ktot if concat_k else c) * 2)   # im2col temp
    vmem_limit = int(min(max(2 * est, 16 * 1024 * 1024), 60 * 1024 * 1024))

    return pl.pallas_call(
        kernel,
        out_shape=jax.ShapeDtypeStruct((n, oh * ow, ocp), out_dtype),
        grid_spec=pltpu.PrefetchScalarGridSpec(
            num_scalar_prefetch=0,
            grid=(n, ocp // tn, m_tiles),
            in_specs=[
                # whole padded image, resident across (OC, M) tiles of a batch
                pl.BlockSpec((None, hp, wp, c), lambda b, jo, mi: (b, 0, 0, 0)),
                # flat weights, OC-tiled; resident across M tiles
                pl.BlockSpec((ktot, tn), lambda b, jo, mi: (0, jo)),
                # OC-tiled bias row
                pl.BlockSpec((1, tn), lambda b, jo, mi: (0, jo)),
            ],
            out_specs=pl.BlockSpec((None, tm, tn), lambda b, jo, mi: (b, mi, jo)),
        ),
        compiler_params=pltpu.CompilerParams(
            dimension_semantics=("parallel", "parallel", "parallel"),
            vmem_limit_bytes=vmem_limit),
    )(xp, w_flat, bias)


# --------------------------------------------------------------------------
# BinConv2d forward (Linear=False, groups=1, dropout=0 path).
# --------------------------------------------------------------------------
def bin_conv2d_forward(x, params, *, kernel_size, stride, padding, eps=1e-4):
    gamma, beta, run_mean, run_var, w, b = params  # w: (OC, C, KH, KW), b: (OC,)

    # ---- BatchNorm2d (eval-mode running stats) + BinActive sign() ----
    # TODO(synk): training-mode (batch-statistics) BatchNorm is not modeled.
    # TODO(synk): for chained BinConv2d blocks, keep activations NHWC/bf16
    # between layers (and emit bf16 from the kernel) to drop these layout passes.
    inv = gamma / jnp.sqrt(run_var + eps)
    xb = (x - run_mean[None, :, None, None]) * inv[None, :, None, None] \
         + beta[None, :, None, None]
    xb = jnp.sign(xb)                                 # exactly {-1, 0, +1}

    # ---- NCHW -> NHWC, spatial zero-pad (post-sign, as in the module), bf16 ----
    xh = jnp.transpose(xb, (0, 2, 3, 1)).astype(jnp.bfloat16)
    xp = jnp.pad(xh, ((0, 0), (padding, padding), (padding, padding), (0, 0)))
    n, hp, wp, c = xp.shape
    kh = kw = kernel_size
    oh = (hp - kh) // stride + 1
    ow = (wp - kw) // stride + 1

    # ---- weights -> flat (KH*KW*C, OCp), OC zero-padded to a lane-dense tile ----
    oc = w.shape[0]
    ocp = ((oc + 127) // 128) * 128
    # TODO(synk): keep tn=128 on v5e (4x128 MXU); 256 targets v6e/v7x 2x256 MXU.
    tn = 256 if ocp % 256 == 0 else 128
    ktot = kh * kw * c
    w_flat = jnp.transpose(w, (2, 3, 1, 0)).reshape(ktot, oc)      # (di,dj,c) x oc
    w_flat = jnp.pad(w_flat, ((0, 0), (0, ocp - oc))).astype(jnp.bfloat16)
    bias = jnp.pad(b, (0, ocp - oc))[None, :].astype(jnp.float32)

    # ---- fused conv + bias + ReLU on the MXU ----
    out = _fused_bin_conv(xp, w_flat, bias, oh=oh, ow=ow, kh=kh, kw=kw,
                          stride=stride, tn=tn, out_dtype=jnp.float32)

    # ---- back to NCHW, drop OC padding ----
    out = out.reshape(n, oh, ow, ocp)[..., :oc]
    return jnp.transpose(out, (0, 3, 1, 2))


# --------------------------------------------------------------------------
# Pure-JAX reference for verification (bf16-rounded weights, f32 conv).
# --------------------------------------------------------------------------
def bin_conv2d_reference(x, params, *, kernel_size, stride, padding, eps=1e-4):
    gamma, beta, run_mean, run_var, w, b = params
    inv = gamma / jnp.sqrt(run_var + eps)
    xb = (x - run_mean[None, :, None, None]) * inv[None, :, None, None] \
         + beta[None, :, None, None]
    xb = jnp.sign(xb)
    w_bf = w.astype(jnp.bfloat16).astype(jnp.float32)
    y = jax.lax.conv_general_dilated(
        xb, w_bf, window_strides=(stride, stride),
        padding=[(padding, padding), (padding, padding)],
        dimension_numbers=("NCHW", "OIHW", "NCHW"),
        precision=jax.lax.Precision.HIGHEST)
    y = y + b[None, :, None, None]
    return jnp.maximum(y, 0.0)


def _make_params(key, c, oc, ks):
    k_w, k_b, k_g, k_be, k_m, k_v = jax.random.split(key, 6)
    w = jax.random.normal(k_w, (oc, c, ks, ks), dtype=jnp.float32) * 0.1
    b = jax.random.normal(k_b, (oc,), dtype=jnp.float32) * 0.1
    gamma = 1.0 + 0.1 * jax.random.normal(k_g, (c,), dtype=jnp.float32)
    beta = 0.1 * jax.random.normal(k_be, (c,), dtype=jnp.float32)
    run_mean = 0.1 * jax.random.normal(k_m, (c,), dtype=jnp.float32)
    run_var = jnp.abs(jax.random.normal(k_v, (c,), dtype=jnp.float32)) + 0.5
    return (gamma, beta, run_mean, run_var, w, b)


if __name__ == "__main__":
    key = jax.random.PRNGKey(0)

    # (N, C, H, W, OC)  -- small shapes consistent with BinConv2d usage.
    cases = [
        (2, 4, 16, 16, 8),      # concat-K path, TN=128, single M tile
        (1, 128, 16, 16, 256),  # per-tap path (deep K), TN=256
        (1, 4, 48, 48, 8),      # concat-K path with M tiled (m_tiles > 1)
    ]
    KS, STRIDE, PAD = 3, 1, 1

    for idx, (N, C, H, W, OC) in enumerate(cases):
        k_case = jax.random.fold_in(key, idx)
        k_x, k_p = jax.random.split(k_case)
        x = jax.random.normal(k_x, (N, C, H, W), dtype=jnp.float32)
        params = _make_params(k_p, C, OC, KS)

        out = bin_conv2d_forward(x, params, kernel_size=KS, stride=STRIDE,
                                 padding=PAD)
        out = jax.block_until_ready(out)

        ref = bin_conv2d_reference(x, params, kernel_size=KS, stride=STRIDE,
                                   padding=PAD)
        assert out.shape == (N, OC, H, W), (idx, out.shape)
        assert jnp.allclose(out, ref, atol=2e-3, rtol=2e-3), \
            f"mismatch vs reference in case {idx}"

    print("KERNEL_OK")
</pallas_src>

<mosaic_0001>
module attributes {stable_mosaic.version = 11 : i64} {
  func.func @_bin_conv_kernel(%arg0: i32, %arg1: i32, %arg2: i32, %arg3: memref<1x18x18x4xbf16, #tpu.memory_space<vmem>>, %arg4: memref<36x128xbf16, #tpu.memory_space<vmem>>, %arg5: memref<1x128xf32, #tpu.memory_space<vmem>>, %arg6: memref<1x256x128xf32, #tpu.memory_space<vmem>>) attributes {dimension_semantics = [#tpu.dimension_semantics<parallel>, #tpu.dimension_semantics<parallel>, #tpu.dimension_semantics<parallel>], iteration_bounds = array<i64: 2, 1, 1>, scalar_prefetch = 0 : i64, scratch_operands = 0 : i64, tpu.core_type = #tpu.core_type<tc>, window_params = [{transform_indices = @transform_0, window_bounds = array<i64: 1, 18, 18, 4>}, {transform_indices = @transform_1, window_bounds = array<i64: 36, 128>}, {transform_indices = @transform_2, window_bounds = array<i64: 1, 128>}, {transform_indices = @transform_3, window_bounds = array<i64: 1, 256, 128>}]} {
    %c16_i32 = arith.constant 16 : i32
    %0 = arith.muli %arg2, %c16_i32 : i32
    %1 = tpu.assume_multiple %0, 16 : i32
    %c0_i32 = arith.constant 0 : i32
    %2 = arith.addi %1, %c0_i32 : i32
    %c0 = arith.constant 0 : index
    %3 = arith.index_cast %2 : i32 to index
    %c0_0 = arith.constant 0 : index
    %c0_1 = arith.constant 0 : index
    %4 = vector.load %arg3[%c0, %3, %c0_0, %c0_1] : memref<1x18x18x4xbf16, #tpu.memory_space<vmem>>, vector<1x16x18x4xbf16>
    %5 = vector.shape_cast %4 : vector<1x16x18x4xbf16> to vector<16x18x4xbf16>
    %6 = vector.extract_strided_slice %5 {offsets = [0, 0, 0], sizes = [16, 16, 4], strides = [1, 1, 1]} : vector<16x18x4xbf16> to vector<16x16x4xbf16>
    %7 = vector.extract_strided_slice %5 {offsets = [0, 1, 0], sizes = [16, 16, 4], strides = [1, 1, 1]} : vector<16x18x4xbf16> to vector<16x16x4xbf16>
    %8 = vector.extract_strided_slice %5 {offsets = [0, 2, 0], sizes = [16, 16, 4], strides = [1, 1, 1]} : vector<16x18x4xbf16> to vector<16x16x4xbf16>
    %c1_i32 = arith.constant 1 : i32
    %9 = arith.addi %1, %c1_i32 : i32
    %c0_2 = arith.constant 0 : index
    %10 = arith.index_cast %9 : i32 to index
    %c0_3 = arith.constant 0 : index
    %c0_4 = arith.constant 0 : index
    %11 = vector.load %arg3[%c0_2, %10, %c0_3, %c0_4] : memref<1x18x18x4xbf16, #tpu.memory_space<vmem>>, vector<1x16x18x4xbf16>
    %12 = vector.shape_cast %11 : vector<1x16x18x4xbf16> to vector<16x18x4xbf16>
    %13 = vector.extract_strided_slice %12 {offsets = [0, 0, 0], sizes = [16, 16, 4], strides = [1, 1, 1]} : vector<16x18x4xbf16> to vector<16x16x4xbf16>
    %14 = vector.extract_strided_slice %12 {offsets = [0, 1, 0], sizes = [16, 16, 4], strides = [1, 1, 1]} : vector<16x18x4xbf16> to vector<16x16x4xbf16>
    %15 = vector.extract_strided_slice %12 {offsets = [0, 2, 0], sizes = [16, 16, 4], strides = [1, 1, 1]} : vector<16x18x4xbf16> to vector<16x16x4xbf16>
    %c2_i32 = arith.constant 2 : i32
    %16 = arith.addi %1, %c2_i32 : i32
    %c0_5 = arith.constant 0 : index
    %17 = arith.index_cast %16 : i32 to index
    %c0_6 = arith.constant 0 : index
    %c0_7 = arith.constant 0 : index
    %18 = vector.load %arg3[%c0_5, %17, %c0_6, %c0_7] : memref<1x18x18x4xbf16, #tpu.memory_space<vmem>>, vector<1x16x18x4xbf16>
    %19 = vector.shape_cast %18 : vector<1x16x18x4xbf16> to vector<16x18x4xbf16>
    %20 = vector.extract_strided_slice %19 {offsets = [0, 0, 0], sizes = [16, 16, 4], strides = [1, 1, 1]} : vector<16x18x4xbf16> to vector<16x16x4xbf16>
    %21 = vector.extract_strided_slice %19 {offsets = [0, 1, 0], sizes = [16, 16, 4], strides = [1, 1, 1]} : vector<16x18x4xbf16> to vector<16x16x4xbf16>
    %22 = vector.extract_strided_slice %19 {offsets = [0, 2, 0], sizes = [16, 16, 4], strides = [1, 1, 1]} : vector<16x18x4xbf16> to vector<16x16x4xbf16>
    %23 = tpu.concatenate %6, %7, %8, %13, %14, %15, %20, %21, %22 in 2 : vector<16x16x4xbf16>, vector<16x16x4xbf16>, vector<16x16x4xbf16>, vector<16x16x4xbf16>, vector<16x16x4xbf16>, vector<16x16x4xbf16>, vector<16x16x4xbf16>, vector<16x16x4xbf16>, vector<16x16x4xbf16> -> vector<16x16x36xbf16>
    %24 = vector.shape_cast %23 : vector<16x16x36xbf16> to vector<256x36xbf16>
    %c0_8 = arith.constant 0 : index
    %c0_9 = arith.constant 0 : index
    %25 = vector.load %arg4[%c0_8, %c0_9] : memref<36x128xbf16, #tpu.memory_space<vmem>>, vector<36x128xbf16>
    %cst = arith.constant dense<0.000000e+00> : vector<256x128xf32>
    %26 = tpu.matmul %24, %25, %cst {dimension_numbers = #tpu.dot_dimension_numbers<[1], [0], [0], [1], [0, 0, 1, 1], [], []>} : vector<256x36xbf16>, vector<36x128xbf16>, vector<256x128xf32> -> vector<256x128xf32>
    %c0_10 = arith.constant 0 : index
    %c0_11 = arith.constant 0 : index
    %27 = vector.load %arg5[%c0_10, %c0_11] : memref<1x128xf32, #tpu.memory_space<vmem>>, vector<1x128xf32>
    %28 = vector.broadcast %27 : vector<1x128xf32> to vector<256x128xf32>
    %29 = arith.addf %26, %28 : vector<256x128xf32>
    %cst_12 = arith.constant 0.000000e+00 : f32
    %30 = vector.broadcast %cst_12 : f32 to vector<256x128xf32>
    %31 = arith.maximumf %29, %30 : vector<256x128xf32>
    %c0_13 = arith.constant 0 : index
    %c0_14 = arith.constant 0 : index
    %c0_15 = arith.constant 0 : index
    %32 = vector.load %arg6[%c0_13, %c0_14, %c0_15] : memref<1x256x128xf32, #tpu.memory_space<vmem>>, vector<1x256x128xf32>
    %33 = vector.shape_cast %32 : vector<1x256x128xf32> to vector<256x128xf32>
    %34 = vector.shape_cast %31 : vector<256x128xf32> to vector<1x256x128xf32>
    tpu.vector_store %arg6[%c0_13, %c0_14, %c0_15], %34 {strides = array<i32>} : memref<1x256x128xf32, #tpu.memory_space<vmem>>, vector<1x256x128xf32>,
    return
  }
  func.func @transform_0(%arg0: i32, %arg1: i32, %arg2: i32) -> (i32, i32, i32, i32) {
    %c0_i32 = arith.constant 0 : i32
    %c0_i32_0 = arith.constant 0 : i32
    %c0_i32_1 = arith.constant 0 : i32
    %c0_i32_2 = arith.constant 0 : i32
    return %arg0, %c0_i32, %c0_i32_0, %c0_i32_1 : i32, i32, i32, i32
  }
  func.func @transform_1(%arg0: i32, %arg1: i32, %arg2: i32) -> (i32, i32) {
    %c0_i32 = arith.constant 0 : i32
    %c0_i32_0 = arith.constant 0 : i32
    return %c0_i32, %arg1 : i32, i32
  }
  func.func @transform_2(%arg0: i32, %arg1: i32, %arg2: i32) -> (i32, i32) {
    %c0_i32 = arith.constant 0 : i32
    %c0_i32_0 = arith.constant 0 : i32
    return %c0_i32, %arg1 : i32, i32
  }
  func.func @transform_3(%arg0: i32, %arg1: i32, %arg2: i32) -> (i32, i32, i32) {
    %c0_i32 = arith.constant 0 : i32
    return %arg0, %arg2, %arg1 : i32, i32, i32
  }
}

</mosaic_0001>

<bundles_post_ra>
// kernel: tpu_custom_call.1
= control target key start
LH: loop header
LB: loop body
LE: loop exit
PB: predicated region body
PF: predicated region fallthrough
CT: control target
= control target key end

     0   :  { %8 = vsyncpa [#allocation3], 0  ;;  %s4116_s0 = inlined_call_operand.vmem [shape: bf16[2,18,18,4], index: 0, kind: input, shape index: {}]   ;;  %s4117_s1 = inlined_call_operand.vmem [shape: bf16[36,128], index: 1, kind: input, shape index: {}]   ;;  %s4118_s2 = inlined_call_operand.vmem [shape: f32[1,128], index: 2, kind: input, shape index: {}]   ;;  %s4119_s3 = inlined_call_operand.hbm [shape: f32[2,256,128], index: 3, kind: output, shape index: {}]  }
   0x1   :  { %10 = vsyncpa [#allocation3 + $0x1], 0  ;;  %s2919_s12 = smov 0   ;;  %s2921_s13 = smov 0  }
   0x2   :  { %s2923_s14 = smov 0   ;;  %s2925_s15 = smov 0  }
   0x3   :  { %s2927_s16 = smov 0   ;;  %s2929_s17 = smov 0  }
   0x4 LB: > { %s2354_s18 = sadd.s32 4294967295, %s2888_s17   ;;  %s2355_s19 = sadd.s32 4294967294, %s2888_s17   ;;  %s2888_s17 = sphi %s2929_s17, %s16_s17   ;;  %s2884_s16 = sphi %s2927_s16, %s4126_s16   ;;  %s2880_s15 = sphi %s2925_s15, %s4125_s15   ;;  %s2876_s14 = sphi %s2923_s14, %s4124_s14   ;;  %s2872_s13 = sphi %s2921_s13, %s4123_s13   ;;  %s2868_s12 = sphi %s2919_s12, %s4122_s12  }
   0x5   : > { %s35_s20 = sadd.s32 1, %s2884_s16  ;;  %s124_s21 = sadd.s32 1, %s2876_s14 }
   0x6   : > { %p37_p0 = scmp.ge.s32.totalorder %s35_s20, 2  ;;  %p134_p1 = scmp.ne.s32.totalorder %s2876_s14, %s2872_s13 }
   0x7   : > { %p135_p2 = scmp.eq.s32.totalorder %s2354_s18, 1  ;;  %p140_p3 = scmp.ne.s32.totalorder %s2872_s13, %s2868_s12 }
   0x8   : > { %s4128_s20 = smov (%p37_p0, %s35_s20), 0  ;;  %p141_p5 = scmp.eq.s32.totalorder %s2355_s19, 1 }
   0x9   : > { %p2959_p4 = por %p135_p2, %p134_p1  ;;  %s117_s23 = ssub.s32 %s2884_s16, %s4128_s20 }
   0xa   : > { %p2360_p6 = scmp.ge.s32.totalorder %s2888_s17, 1  ;;  %p122_p7 = scmp.eq.s32.totalorder %s117_s23, 0 }
   0xb   : > { %p2966_p8 = por %p141_p5, %p140_p3  ;;  %p180_p9 = scmp.lt.s32.totalorder %s2888_s17, 3 }
   0xc   : > { %s2972_s25 = scalar_select %p122_p7, %s2876_s14, %s124_s21  }
   0xd   : > { %p181_p10 = pnand %p2360_p6, %p180_p9 }
   0xe   : > { %p211_p11 = scmp.lt.s32.totalorder (!%p181_p10), %s2880_s15, 1  ;;  %s2890_s4 = smov (!%p181_p10), 4  }
   0xf   : > { %184 = sbr.rel (%p181_p10) target bundleno = 630 (0x276), region = 32  ;;  %s2891_s5 = smov (!%p181_p10), 8  }
  0x10   : > { %s2892_s6 = smov (!%p181_p10), 12   ;;  %s2893_s7 = smov (!%p181_p10), 16  }
  0x11   : > { %s2894_s8 = smov (!%p181_p10), 24   ;;  %s2895_s9 = smov (!%p181_p10), 20  }
  0x12   : > { %s2896_s10 = smov (!%p181_p10), 28   ;;  %s2897_s11 = smov (!%p181_p10), 32  }
  0x13   : > { %s208_s28 = sand.u32 (!%p181_p10), 1, %s2872_s13  }
  0x14   : > { %s212_s26 = scalar_select %p211_p11, %s2880_s15, 1  ;;  %vm509_vm0 = vsmask.f32 7424  ;;  %vm734_vm1 = vcmask 1046528   ;;  %vm1776_vm2 = vcmask 64512   ;;  %vm1743_vm3 = vcmask 31744  }
  0x15   : > { %vm1809_vm4 = vcmask 97280   ;;  %vm2064_vm5 = vcmask 1041408   ;;  %vm1842_vm6 = vcmask 130048   ;;  %vm1875_vm7 = vcmask 162816  }
  0x16   : > { %s2740_s27 = smul.u32 216, %s212_s26  ;;  %vm1908_vm8 = vcmask 195584   ;;  %vm1941_vm9 = vcmask 228352   ;;  %vm1974_vm10 = vcmask 261120   ;;  %vm2031_vm11 = vcmask 293888  }
  0x18   : > { %s2979_s30 = scalar_lea.vmem %s4116_s0, %s2740_s27  ;;  %s2830_s27 = scalar_lea.hbm %s4119_s3, 512 }
  0x19   : > { %v2982_v0 = vld [vmem:[%s2979_s30 + $0x30] sm:$0xff]  ;;  %v243_v1 = vld [vmem:[%s2979_s30 + $0x38] sm:$0x1]  ;;  %v237_v4 = vld [vmem:[%s2979_s30 + $0x20] sm:$0x1] }
  0x1a   : > { %v2986_v2 = vld [vmem:[%s2979_s30 + $0x18] sm:$0xff]  ;;  %v481_v3 = vunpack.c.l.b16 %v243_v1  ;;  %v2990_v5 = vld [vmem:[%s2979_s30] sm:$0xff]  ;;  %v231_v6 = vld [vmem:[%s2979_s30 + $0x8] sm:$0x1]  ;;  %v559_v7 = vshrl.u32 %v2982_v0, 16  ;;  %v561_v8 = vshll.u32 %v2982_v0, 16  ;;  %v479_v9 = vunpack.c.l.b16 %v237_v4 }
  0x1b   : > { %v535_v10 = vshrl.u32 %v2986_v2, 16  ;;  %v246_v11 = vld [vmem:[%s2979_s30 + $0x44] sm:$0x1]  ;;  %v537_v13 = vshll.u32 %v2986_v2, 16  ;;  %v477_v14 = vunpack.c.l.b16 %v231_v6  ;;  %v511_v15 = vshrl.u32 %v2990_v5, 16  ;;  %v3002_v16 = vld [vmem:[%s2979_s30 + $0x3c] sm:$0xff] }
  0x1c   : > { %v2997_v12 = vpack.c.b16 %v481_v3, %v481_v3  ;;  %v563_v17 = vrot.slane %v561_v8, 1  ;;  %v3004_v18 = vpack.c.b16 %v479_v9, %v479_v9  ;;  %v513_v19 = vshll.u32 %v2990_v5, 16  ;;  %v240_v25 = vld [vmem:[%s2979_s30 + $0x2c] sm:$0x1]  ;;  %v3016_v30 = vld [vmem:[%s2979_s30 + $0x24] sm:$0xff]  ;;  %v3043_v59 = vld [vmem:[%s2979_s30 + $0x54] sm:$0xff] }
  0x1d   : > { %v482_v20 = vunpack.c.l.b16 %v246_v11  ;;  %v539_v22 = vrot.slane %v537_v13, 1  ;;  %v3008_v23 = vpack.c.b16 %v477_v14, %v477_v14  ;;  %v571_v24 = vshrl.u32 %v3002_v16, 16  ;;  %v3022_v39 = vld [vmem:[%s2979_s30 + $0xc] sm:$0xff]  ;;  %v234_v40 = vld [vmem:[%s2979_s30 + $0x14] sm:$0x1]  ;;  %v3028_v45 = vld [vmem:[%s2979_s30 + $0x60] sm:$0xff] }
  0x1e   : > { %v566_v21 = vshll.u32 %v2997_v12, 16  ;;  %v564_v26 = vor.u32 %v563_v17, %v559_v7  ;;  %v542_v27 = vshll.u32 %v3004_v18, 16  ;;  %v515_v28 = vrot.slane %v513_v19, 1  ;;  %v255_v46 = vld [vmem:[%s2979_s30 + $0x68] sm:$0x1] }
  0x1f   : > { %v3013_v29 = vpack.c.b16 %v482_v20, %v482_v20  ;;  %v540_v32 = vor.u32 %v539_v22, %v535_v10  ;;  %v518_v33 = vshll.u32 %v3008_v23, 16  ;;  %v573_v34 = vshll.u32 %v3002_v16, 16  ;;  %v252_v60 = vld [vmem:[%s2979_s30 + $0x5c] sm:$0x1]  ;;  %v3054_v8 = vld [vmem:[%s2979_s30 + $0x48] sm:$0xff] }
  0x20   : > { %v568_v31 = vrot.slane %v566_v21, 1  ;;  %v544_v35 = vrot.slane %v542_v27, 1  ;;  %v516_v36 = vor.u32 %v515_v28, %v511_v15  ;;  %v480_v38 = vunpack.c.l.b16 %v240_v25  ;;  %v249_v9 = vld [vmem:[%s2979_s30 + $0x50] sm:$0x1]  ;;  %v264_v21 = vld [vmem:[%s2979_s30 + $0x8c] sm:$0x1] }
  0x21   : > { %v578_v37 = vshll.u32 %v3013_v29, 16  ;;  %v520_v42 = vrot.slane %v518_v33, 1  ;;  %v575_v43 = vrot.slane %v573_v34, 1  ;;  %v547_v44 = vshrl.u32 %v3016_v30, 16  ;;  %v3066_v27 = vld [vmem:[%s2979_s30 + $0x84] sm:$0xff]  ;;  %v3072_v34 = vld [vmem:[%s2979_s30 + $0x78] sm:$0xff] }
  0x22   : > { %v569_v41 = vsel %vm509_vm0, %v564_v26, %v568_v31  ;;  %v545_v47 = vsel %vm509_vm0, %v540_v32, %v544_v35  ;;  %v3033_v49 = vpack.c.b16 %v480_v38, %v480_v38  ;;  %v549_v50 = vshll.u32 %v3016_v30, 16 }
  0x23   : > { %710 = vrot.lane.b32.xlu2 %v569_v41, %s2890_s4  ;;  %v580_v48 = vrot.slane %v578_v37, 1  ;;  %706 = vrot.lane.b32.xlu1 %v545_v47, %s2890_s4  ;;  %v521_v51 = vsel %vm509_vm0, %v516_v36, %v520_v42  ;;  %v576_v52 = vor.u32 %v575_v43, %v571_v24  ;;  %v478_v53 = vunpack.c.l.b16 %v234_v40  ;;  %v261_v40 = vld [vmem:[%s2979_s30 + $0x80] sm:$0x1] }
  0x24   : > { %v523_v54 = vshrl.u32 %v3022_v39, 16  ;;  %702 = vrot.lane.b32.xlu0 %v521_v51, %s2890_s4  ;;  %v551_v55 = vrot.slane %v549_v50, 1  ;;  %v554_v56 = vshll.u32 %v3033_v49, 16  ;;  %v525_v57 = vshll.u32 %v3022_v39, 16  ;;  %v3087_v50 = vld [vmem:[%s2979_s30 + $0x6c] sm:$0xff] }
  0x25   : > { %v485_v58 = vunpack.c.l.b16 %v255_v46  ;;  %v581_v61 = vsel %vm509_vm0, %v576_v52, %v580_v48  ;;  %v3047_v62 = vpack.c.b16 %v478_v53, %v478_v53  ;;  %v607_v63 = vshrl.u32 %v3028_v45, 16  ;;  %v258_v51 = vld [vmem:[%s2979_s30 + $0x74] sm:$0x1] }
  0x26   : > { %v609_v1 = vshll.u32 %v3028_v45, 16  ;;  %v552_v3 = vor.u32 %v551_v55, %v547_v44  ;;  %v556_v4 = vrot.slane %v554_v56, 1  ;;  %v527_v6 = vrot.slane %v525_v57, 1  ;;  %v3093_v56 = vld [vmem:[%s2979_s30 + $0xa8] sm:$0xff] }
  0x27   : > { %v3051_v7 = vpack.c.b16 %v485_v58, %v485_v58  ;;  %v530_v10 = vshll.u32 %v3047_v62, 16  ;;  %v484_v13 = vunpack.c.l.b16 %v252_v60  ;;  %v595_v14 = vshrl.u32 %v3043_v59, 16 }
  0x28   : > { %v611_v11 = vrot.slane %v609_v1, 1  ;;  %v557_v15 = vsel %vm509_vm0, %v552_v3, %v556_v4  ;;  %v528_v17 = vor.u32 %v527_v6, %v523_v54  ;;  %v597_v20 = vshll.u32 %v3043_v59, 16 }
  0x29   : > { %v614_v19 = vshll.u32 %v3051_v7, 16  ;;  %v532_v22 = vrot.slane %v530_v10, 1  ;;  %v3063_v25 = vpack.c.b16 %v484_v13, %v484_v13  ;;  %v483_v26 = vunpack.c.l.b16 %v249_v9 }
  0x2a   : > { %v612_v24 = vor.u32 %v611_v11, %v607_v63  ;;  %v599_v31 = vrot.slane %v597_v20, 1  ;;  %v583_v32 = vshrl.u32 %v3054_v8, 16  ;;  %v585_v33 = vshll.u32 %v3054_v8, 16  ;;  %v273_v63 = vld [vmem:[%s2979_s30 + $0xb0] sm:$0x1] }
  0x2b   : > { %712 = vrot.lane.b32.xlu2 %v581_v61, %s2890_s4  ;;  %v616_v28 = vrot.slane %v614_v19, 1  ;;  %708 = vrot.lane.b32.xlu1 %v557_v15, %s2890_s4  ;;  %v533_v35 = vsel %vm509_vm0, %v528_v17, %v532_v22  ;;  %v602_v36 = vshll.u32 %v3063_v25, 16  ;;  %v3077_v37 = vpack.c.b16 %v483_v26, %v483_v26  ;;  %v270_v15 = vld [vmem:[%s2979_s30 + $0xa4] sm:$0x1] }
  0x2c   : > { %v488_v38 = vunpack.c.l.b16 %v264_v21  ;;  %704 = vrot.lane.b32.xlu0 %v533_v35, %s2890_s4  ;;  %v600_v41 = vor.u32 %v599_v31, %v595_v14  ;;  %v587_v42 = vrot.slane %v585_v33, 1  ;;  %v643_v43 = vshrl.u32 %v3066_v27, 16  ;;  %v3105_v14 = vld [vmem:[%s2979_s30 + $0x9c] sm:$0xff]  ;;  %v3119_v35 = vld [vmem:[%s2979_s30 + $0x90] sm:$0xff] }
  0x2d   : > { %v604_v44 = vrot.slane %v602_v36, 1  ;;  %v590_v46 = vshll.u32 %v3077_v37, 16  ;;  %v645_v48 = vshll.u32 %v3066_v27, 16  ;;  %v617_v52 = vsel %vm509_vm0, %v612_v24, %v616_v28  ;;  %v267_v36 = vld [vmem:[%s2979_s30 + $0x98] sm:$0x1] }
  0x2e   : > { %v3083_v47 = vpack.c.b16 %v488_v38, %v488_v38  ;;  %v588_v53 = vor.u32 %v587_v42, %v583_v32  ;;  %v487_v54 = vunpack.c.l.b16 %v261_v40  ;;  %v633_v55 = vshll.u32 %v3072_v34, 16 }
  0x2f   : > { %v592_v57 = vrot.slane %v590_v46, 1  ;;  %v647_v58 = vrot.slane %v645_v48, 1  ;;  %v631_v61 = vshrl.u32 %v3072_v34, 16  ;;  %v605_v1 = vsel %vm509_vm0, %v600_v41, %v604_v44 }
  0x30   : > { %v650_v60 = vshll.u32 %v3083_v47, 16  ;;  %v3099_v3 = vpack.c.b16 %v487_v54, %v487_v54  ;;  %v635_v4 = vrot.slane %v633_v55, 1  ;;  %v486_v6 = vunpack.c.l.b16 %v258_v51 }
  0x31   : > { %v593_v9 = vsel %vm509_vm0, %v588_v53, %v592_v57  ;;  %v648_v10 = vor.u32 %v647_v58, %v643_v43  ;;  %v619_v11 = vshrl.u32 %v3087_v50, 16  ;;  %v621_v13 = vshll.u32 %v3087_v50, 16  ;;  %v276_v58 = vld [vmem:[%s2979_s30 + $0xbc] sm:$0x1] }
  0x32   : > { %v652_v17 = vrot.slane %v650_v60, 1  ;;  %v638_v19 = vshll.u32 %v3099_v3, 16  ;;  %v3110_v20 = vpack.c.b16 %v486_v6, %v486_v6  ;;  %v491_v21 = vunpack.c.l.b16 %v273_v63 }
  0x33   : > { %718 = vrot.lane.b32.xlu2 %v617_v52, %s2890_s4  ;;  %716 = vrot.lane.b32.xlu1 %v605_v1, %s2890_s4  ;;  %v636_v22 = vor.u32 %v635_v4, %v631_v61  ;;  %v623_v24 = vrot.slane %v621_v13, 1  ;;  %v681_v26 = vshll.u32 %v3093_v56, 16  ;;  %v490_v33 = vunpack.c.l.b16 %v270_v15  ;;  %v3138_v1 = vld [vmem:[%s2979_s30 + $0xb4] sm:$0xff] }
  0x34   : > { %714 = vrot.lane.b32.xlu0 %v593_v9, %s2890_s4  ;;  %v640_v28 = vrot.slane %v638_v19, 1  ;;  %v626_v31 = vshll.u32 %v3110_v20, 16  ;;  %v3116_v32 = vpack.c.b16 %v491_v21, %v491_v21  ;;  %v669_v40 = vshll.u32 %v3105_v14, 16 }
  0x35   : > { %v624_v38 = vor.u32 %v623_v24, %v619_v11  ;;  %v653_v41 = vsel %vm509_vm0, %v648_v10, %v652_v17  ;;  %v679_v43 = vshrl.u32 %v3093_v56, 16  ;;  %v3125_v44 = vpack.c.b16 %v490_v33, %v490_v33 }
  0x36   : > { %v628_v42 = vrot.slane %v626_v31, 1  ;;  %v683_v46 = vrot.slane %v681_v26, 1  ;;  %v686_v48 = vshll.u32 %v3116_v32, 16  ;;  %v667_v51 = vshrl.u32 %v3105_v14, 16 }
  0x37   : > { %v489_v52 = vunpack.c.l.b16 %v267_v36  ;;  %v641_v53 = vsel %vm509_vm0, %v636_v22, %v640_v28  ;;  %v671_v54 = vrot.slane %v669_v40, 1  ;;  %v674_v55 = vshll.u32 %v3125_v44, 16 }
  0x38   : > { %v657_v57 = vshll.u32 %v3119_v35, 16  ;;  %v629_v60 = vsel %vm509_vm0, %v624_v38, %v628_v42  ;;  %v655_v63 = vshrl.u32 %v3119_v35, 16  ;;  %v684_v6 = vor.u32 %v683_v46, %v679_v43 }
  0x39   : > { %v3134_v61 = vpack.c.b16 %v489_v52, %v489_v52  ;;  %v688_v9 = vrot.slane %v686_v48, 1  ;;  %v492_v11 = vunpack.c.l.b16 %v276_v58  ;;  %v672_v13 = vor.u32 %v671_v54, %v667_v51 }
  0x3a   : > { %v659_v4 = vrot.slane %v657_v57, 1  ;;  %v676_v15 = vrot.slane %v674_v55, 1  ;;  %v693_v22 = vshll.u32 %v3138_v1, 16  ;;  %v691_v31 = vshrl.u32 %v3138_v1, 16 }
  0x3b   : > { %724 = vrot.lane.b32.xlu2 %v653_v41, %s2890_s4  ;;  %722 = vrot.lane.b32.xlu1 %v641_v53, %s2890_s4  ;;  %v662_v10 = vshll.u32 %v3134_v61, 16  ;;  %v3144_v21 = vpack.c.b16 %v492_v11, %v492_v11  ;;  %v689_v24 = vsel %vm509_vm0, %v684_v6, %v688_v9  ;;  %v738_v38 = vrot.slane %v3022_v39, 1 }
  0x3c   : > { %720 = vrot.lane.b32.xlu0 %v629_v60, %s2890_s4  ;;  %v660_v17 = vor.u32 %v659_v4, %v655_v63  ;;  %v677_v26 = vsel %vm509_vm0, %v672_v13, %v676_v15  ;;  %v695_v33 = vrot.slane %v693_v22, 1  ;;  %v739_v40 = vrot.slane %v3047_v62, 1 }
  0x3d   : > { %v664_v19 = vrot.slane %v662_v10, 1  ;;  %v698_v36 = vshll.u32 %v3144_v21, 16  ;;  %v735_v41 = vrot.slane %v2990_v5, 1  ;;  %v736_v42 = vrot.slane %v3008_v23, 1 }
  0x3e   : > { %v696_v43 = vor.u32 %v695_v33, %v691_v31  ;;  %v740_v48 = vsel %vm734_vm1, %v738_v38, %v739_v40  ;;  %v747_v62 = vrot.slane %v2982_v0, 1  ;;  %v748_v53 = vrot.slane %v2997_v12, 1 }
  0x3f   : > { %v665_v28 = vsel %vm509_vm0, %v660_v17, %v664_v19  ;;  %v700_v46 = vrot.slane %v698_v36, 1  ;;  %v737_v51 = vsel %vm734_vm1, %v735_v41, %v736_v42  ;;  %v744_v23 = vrot.slane %v3016_v30, 1  ;;  %v3218_v42 = vld [vmem:[%s2979_s30 + $0xc] sm:$0xff] }
  0x40   : > { %v745_v54 = vrot.slane %v3033_v49, 1  ;;  %v741_v55 = vrot.slane %v2986_v2, 1  ;;  %v742_v57 = vrot.slane %v3004_v18, 1  ;;  %v749_v58 = vsel %vm734_vm1, %v747_v62, %v748_v53  ;;  %v3244_v62 = vld [vmem:[%s2979_s30 + $0x48] sm:$0xff]  ;;  %v3247_v53 = vld [vmem:[%s2979_s30 + $0x3c] sm:$0xff] }
  0x41   : > { %v701_v52 = vsel %vm509_vm0, %v696_v43, %v700_v46  ;;  %v756_v12 = vrot.slane %v3043_v59, 1  ;;  %v757_v4 = vrot.slane %v3063_v25, 1  ;;  %v753_v49 = vrot.slane %v3054_v8, 1 }
  0x42   : > { %v746_v60 = vsel %vm734_vm1, %v744_v23, %v745_v54  ;;  %v743_v63 = vsel %vm734_vm1, %v741_v55, %v742_v57  ;;  %v754_v18 = vrot.slane %v3077_v37, 1  ;;  %v750_v6 = vrot.slane %v3002_v16, 1  ;;  %v3258_v54 = vld [vmem:[%s2979_s30 + $0x78] sm:$0xff]  ;;  %v3261_v55 = vld [vmem:[%s2979_s30 + $0x6c] sm:$0xff]  ;;  %v2703_v57 = vld [vmem:[%s2979_s30 + $0x60] sm:$0xff] }
  0x43   : > { %730 = vrot.lane.b32.xlu2 %v689_v24, %s2890_s4  ;;  %728 = vrot.lane.b32.xlu1 %v677_v26, %s2890_s4  ;;  %v751_v9 = vrot.slane %v3013_v29, 1  ;;  %v758_v10 = vsel %vm734_vm1, %v756_v12, %v757_v4  ;;  %v765_v25 = vrot.slane %v3072_v34, 1  ;;  %v766_v15 = vrot.slane %v3099_v3, 1  ;;  %v3274_v12 = vld [vmem:[%s2979_s30 + $0x9c] sm:$0xff]  ;;  %v2365_v4 = vld [vmem:[%s2979_s30 + $0x14] sm:$0x1] }
  0x44   : > { %726 = vrot.lane.b32.xlu0 %v665_v28, %s2890_s4  ;;  %v755_v11 = vsel %vm734_vm1, %v753_v49, %v754_v18  ;;  %v762_v37 = vrot.slane %v3087_v50, 1  ;;  %v763_v29 = vrot.slane %v3110_v20, 1  ;;  %v759_v17 = vrot.slane %v3028_v45, 1  ;;  %v2707_v49 = vld [vmem:[%s2979_s30 + $0x90] sm:$0xff] }
  0x45   : > { %v752_v13 = vsel %vm734_vm1, %v750_v6, %v751_v9  ;;  %v760_v19 = vrot.slane %v3051_v7, 1  ;;  %v767_v22 = vsel %vm734_vm1, %v765_v25, %v766_v15  ;;  %v774_v3 = vrot.slane %v3105_v14, 1  ;;  %v3279_v6 = vld [vmem:[%s2979_s30 + $0x84] sm:$0xff] }
  0x46   : > { %v764_v24 = vsel %vm734_vm1, %v762_v37, %v763_v29  ;;  %v775_v28 = vrot.slane %v3125_v44, 1  ;;  %v771_v20 = vrot.slane %v3119_v35, 1  ;;  %v772_v7 = vrot.slane %v3134_v61, 1 }
  0x47   : > { %v761_v26 = vsel %vm734_vm1, %v759_v17, %v760_v19  ;;  %v768_v31 = vrot.slane %v3066_v27, 1  ;;  %v769_v33 = vrot.slane %v3083_v47, 1  ;;  %v780_v44 = vrot.slane %v3138_v1, 1 }
  0x48   : > { %v776_v36 = vsel %vm734_vm1, %v774_v3, %v775_v28  ;;  %v773_v38 = vsel %vm734_vm1, %v771_v20, %v772_v7  ;;  %v781_v61 = vrot.slane %v3144_v21, 1  ;;  %v777_v47 = vrot.slane %v3093_v56, 1  ;;  %v2699_v21 = vld [vmem:[%s2979_s30 + $0x30] sm:$0xff]  ;;  %v3308_v7 = vld [vmem:[%s2979_s30 + $0xa8] sm:$0xff] }
  0x49   : > { %v770_v40 = vsel %vm734_vm1, %v768_v31, %v769_v33  ;;  %v778_v41 = vrot.slane %v3116_v32, 1  ;;  %v3228_v32 = vld [vmem:[%s2979_s30 + $0x24] sm:$0xff]  ;;  %v1074_v37 = vshll.u32 %v3261_v55, 16  ;;  %v978_v19 = vshll.u32 %v3218_v42, 16 }
  0x4a   : > { %v782_v43 = vsel %vm734_vm1, %v780_v44, %v781_v61  ;;  %v1120_v3 = vshrl.u32 %v3274_v12, 16  ;;  %v1072_v31 = vshrl.u32 %v3261_v55, 16 }
  0x4b   : > { %785 = vrot.lane.b32.xlu2 %v740_v48, %s2891_s5  ;;  %783 = vrot.lane.b32.xlu1 %v737_v51, %s2891_s5  ;;  %v779_v46 = vsel %vm734_vm1, %v777_v47, %v778_v41  ;;  %v3231_v48 = vld [vmem:[%s2979_s30 + $0x18] sm:$0xff]  ;;  %v1076_v33 = vrot.slane %v1074_v37, 1 }
  0x4c   : > { %732 = vrot.lane.b32.xlu0 %v701_v52, %s2890_s4  ;;  %v3241_v52 = vld [vmem:[%s2979_s30 + $0x54] sm:$0xff]  ;;  %s2361_s4 = sshll.u32 %s208_s28, 8 }
  0x4d   : > { %v3331_v37 = vld [vmem:[%s2979_s30 + $0x78] sm:$0xff] }
  0x53   : > { %791 = vrot.lane.b32.xlu2 %v749_v58, %s2891_s5  ;;  %789 = vrot.lane.b32.xlu1 %v746_v60, %s2891_s5  ;;  %v2401_v60 = vld [vmem:[%s2979_s30 + $0xa4] sm:$0x1] }
  0x54   : > { %787 = vrot.lane.b32.xlu0 %v743_v63, %s2891_s5  ;;  %v2389_v63 = vld [vmem:[%s2979_s30 + $0x74] sm:$0x1]  ;;  %v955_v18 = vunpack.c.l.b16 %v2401_v60 }
  0x55   : > { %v951_v9 = vunpack.c.l.b16 %v2389_v63 }
  0x57   : > { %v3291_v15 = vpack.c.b16 %v951_v9, %v951_v9  ;;  %v3327_v9 = vld [vmem:[%s2979_s30 + $0xa8] sm:$0xff] }
  0x5b   : > { %797 = vrot.lane.b32.xlu2 %v758_v10, %s2891_s5  ;;  %795 = vrot.lane.b32.xlu1 %v755_v11, %s2891_s5  ;;  %v943_v10 = vunpack.c.l.b16 %v2365_v4  ;;  %v3284_v11 = vpack.c.b16 %v955_v18, %v955_v18  ;;  %v2437_v4 = vld [vmem:[%s2979_s30 + $0x80] sm:$0x1] }
  0x5c   : > { %793 = vrot.lane.b32.xlu0 %v752_v13, %s2891_s5  ;;  %v1122_v13 = vshll.u32 %v3274_v12, 16 }
  0x5d   : > { %v3296_v17 = vpack.c.b16 %v943_v10, %v943_v10  ;;  %v1127_v20 = vshll.u32 %v3284_v11, 16 }
  0x5e   : > { %v1124_v28 = vrot.slane %v1122_v13, 1 }
  0x5f   : > { %v983_v44 = vshll.u32 %v3296_v17, 16  ;;  %v1129_v47 = vrot.slane %v1127_v20, 1  ;;  %v1586_v20 = vshll.u32 %v3327_v9, 16 }
  0x60   : > { %v1125_v61 = vor.u32 %v1124_v28, %v1120_v3  ;;  %v1235_v3 = vrot.slane %v3274_v12, 1 }
  0x61   : > { %v985_v63 = vrot.slane %v983_v44, 1  ;;  %v2377_v44 = vld [vmem:[%s2979_s30 + $0x44] sm:$0x1] }
  0x62   : > { %v1130_v18 = vsel %vm509_vm0, %v1125_v61, %v1129_v47  ;;  %v1223_v47 = vrot.slane %v3261_v55, 1 }
  0x63   : > { %803 = vrot.lane.b32.xlu2 %v767_v22, %s2891_s5  ;;  %801 = vrot.lane.b32.xlu1 %v764_v24, %s2891_s5  ;;  %v2711_v24 = vld [vmem:[%s2979_s30 + $0xc0] sm:$0xff] }
  0x64   : > { %799 = vrot.lane.b32.xlu0 %v761_v26, %s2891_s5  ;;  %v3303_v26 = vld [vmem:[%s2979_s30 + $0xb4] sm:$0xff] }
  0x6b   : > { %809 = vrot.lane.b32.xlu2 %v776_v36, %s2891_s5  ;;  %807 = vrot.lane.b32.xlu1 %v773_v38, %s2891_s5  ;;  %v1079_v36 = vshll.u32 %v3291_v15, 16  ;;  %v976_v38 = vshrl.u32 %v3218_v42, 16 }
  0x6c   : > { %805 = vrot.lane.b32.xlu0 %v770_v40, %s2891_s5  ;;  %v980_v40 = vrot.slane %v978_v19, 1  ;;  %v1415_v19 = vunpack.c.l.b16 %v2437_v4  ;;  %v1536_v4 = vshrl.u32 %v3331_v37, 16 }
  0x6e   : > { %v981_v60 = vor.u32 %v980_v40, %v976_v38  ;;  %v3344_v38 = vpack.c.b16 %v1415_v19, %v1415_v19  ;;  %v1538_v40 = vshll.u32 %v3331_v37, 16  ;;  %v1026_v19 = vshll.u32 %v3247_v53, 16 }
  0x73   : > { %895 = vrot.lane.b32.xlu2 %v3218_v42, %s2892_s6  ;;  %813 = vrot.lane.b32.xlu1 %v782_v43, %s2891_s5  ;;  %v1077_v43 = vor.u32 %v1076_v33, %v1072_v31 }
  0x74   : > { %811 = vrot.lane.b32.xlu0 %v779_v46, %s2891_s5  ;;  %v1081_v46 = vrot.slane %v1079_v36, 1  ;;  %v1236_v36 = vrot.slane %v3284_v11, 1 }
  0x76   : > { %v1082_v13 = vsel %vm509_vm0, %v1077_v43, %v1081_v46  ;;  %v1224_v43 = vrot.slane %v3291_v15, 1 }
  0x7b   : > { %901 = vrot.lane.b32.xlu2 %v2699_v21, %s2892_s6  ;;  %899 = vrot.lane.b32.xlu1 %v3228_v32, %s2892_s6  ;;  %v2449_v21 = vld [vmem:[%s2979_s30 + $0xb0] sm:$0x1] }
  0x7c   : > { %897 = vrot.lane.b32.xlu0 %v3231_v48, %s2892_s6  ;;  %v1419_v10 = vunpack.c.l.b16 %v2449_v21  ;;  %v1588_v21 = vrot.slane %v1586_v20, 1 }
  0x7d   : > { %v3238_v51 = vpop.permute.xlu2 %710 }
  0x7e   : > { %v3337_v28 = vpack.c.b16 %v1419_v10, %v1419_v10  ;;  %v1225_v10 = vsel %vm734_vm1, %v1223_v47, %v1224_v43  ;;  %v1024_v47 = vshrl.u32 %v3247_v53, 16  ;;  %v1028_v43 = vrot.slane %v1026_v19, 1  ;;  %v2413_v19 = vld [vmem:[%s2979_s30 + $0x20] sm:$0x1] }
  0x80   : > { %v1591_v11 = vshll.u32 %v3337_v28, 16 }
  0x82   : > { %v1593_v15 = vrot.slane %v1591_v11, 1  ;;  %v2425_v11 = vld [vmem:[%s2979_s30 + $0x50] sm:$0x1] }
  0x83   : > { %907 = vrot.lane.b32.xlu2 %v3241_v52, %s2892_s6  ;;  %905 = vrot.lane.b32.xlu1 %v3244_v62, %s2892_s6 }
  0x84   : > { %903 = vrot.lane.b32.xlu0 %v3247_v53, %s2892_s6 }
  0x85   : > { %v3255_v23 = vpop.permute.xlu2 %712 }
  0x8b   : > { %913 = vrot.lane.b32.xlu2 %v3258_v54, %s2892_s6  ;;  %911 = vrot.lane.b32.xlu1 %v3261_v55, %s2892_s6 }
  0x8c   : > { %909 = vrot.lane.b32.xlu0 %v2703_v57, %s2892_s6 }
  0x8d   : > { %v3269_v58 = vpop.permute.xlu2 %718 }
  0x93   : > { %919 = vrot.lane.b32.xlu2 %v3274_v12, %s2892_s6  ;;  %917 = vrot.lane.b32.xlu1 %v2707_v49, %s2892_s6 }
  0x94   : > { %915 = vrot.lane.b32.xlu0 %v3279_v6, %s2892_s6 }
  0x95   : > { %v3289_v25 = vpop.permute.xlu2 %724  ;;  %v3294_v29 = vpop.permute.xlu1 %706 }
  0x96   : > { %v3299_v22 = vpop.permute.xlu0 %702 }
  0x9b   : > { %925 = vrot.lane.b32.xlu2 %v2711_v24, %s2892_s6  ;;  %923 = vrot.lane.b32.xlu1 %v3303_v26, %s2892_s6  ;;  %v986_v24 = vsel %vm509_vm0, %v981_v60, %v985_v63  ;;  %v947_v60 = vunpack.c.l.b16 %v2377_v44  ;;  %v1237_v63 = vsel %vm734_vm1, %v1235_v3, %v1236_v36 }
  0x9c   : > { %921 = vrot.lane.b32.xlu0 %v3308_v7, %s2892_s6  ;;  %s3984_s6 = scalar_lea.vmem [#allocation2], %s2361_s4 }
  0x9d   : > { %v3319_v41 = vpop.permute.xlu2 %730  ;;  %v3322_v57 = vpop.permute.xlu1 %708 }
  0x9e   : > { %v705_v49 = vpop.permute.xlu0 %704 }
  0x9f   : > { %v1747_v31 = vsel %vm1743_vm3, %v3022_v39, %v705_v49  ;;  %v1584_v39 = vshrl.u32 %v3327_v9, 16  ;;  %v1540_v49 = vrot.slane %v1538_v40, 1 }
  0xa1   : > { %v1589_v55 = vor.u32 %v1588_v21, %v1584_v39  ;;  %v1541_v20 = vor.u32 %v1540_v49, %v1536_v4  ;;  %v1699_v4 = vrot.slane %v3327_v9, 1  ;;  %v1700_v49 = vrot.slane %v3337_v28, 1  ;;  %v3403_v28 = vld [vmem:[%s2979_s30 + $0x18] sm:$0xff] }
  0xa3   : > { %1191 = vrot.lane.b32.xlu2 %v1130_v18, %s2893_s7  ;;  %1183 = vrot.lane.b32.xlu1 %v1082_v13, %s2893_s7  ;;  %v1543_v18 = vshll.u32 %v3344_v38, 16  ;;  %v3364_v13 = vpack.c.b16 %v947_v60, %v947_v60  ;;  %v1594_v44 = vsel %vm509_vm0, %v1589_v55, %v1593_v15  ;;  %v1687_v55 = vrot.slane %v3331_v37, 1 }
  0xa4   : > { %1167 = vrot.lane.b32.xlu0 %v986_v24, %s2893_s7  ;;  %v1753_v24 = vsel %vm1743_vm3, %v2982_v0, %v3238_v51  ;;  %v1029_v51 = vor.u32 %v1028_v43, %v1024_v47  ;;  %v1688_v15 = vrot.slane %v3344_v38, 1 }
  0xa5   : > { %v786_v33 = vpop.permute.xlu2 %785  ;;  %v717_v61 = vpop.permute.xlu1 %716  ;;  %v1031_v39 = vshll.u32 %v3364_v13, 16 }
  0xa6   : > { %v3349_v12 = vsel %vm1776_vm2, %v1747_v31, %v786_v33  ;;  %v3353_v46 = vpop.permute.xlu0 %714  ;;  %v1545_v31 = vrot.slane %v1543_v18, 1  ;;  %v1759_v60 = vsel %vm1743_vm3, %v3043_v59, %v717_v61  ;;  %v3398_v59 = vld [vmem:[%s2979_s30 + $0x48] sm:$0xff]  ;;  %v1411_v61 = vunpack.c.l.b16 %v2425_v11 }
  0xa7   : > { %v1033_v21 = vrot.slane %v1031_v39, 1  ;;  %v1490_v38 = vshll.u32 %v3398_v59, 16  ;;  %v1212_v39 = vrot.slane %v3364_v13, 1  ;;  %v1745_v11 = vsel %vm1743_vm3, %v2990_v5, %v3299_v22 }
  0xa8   : > { %v1546_v0 = vsel %vm509_vm0, %v1541_v20, %v1545_v31  ;;  %v1407_v20 = vunpack.c.l.b16 %v2413_v19  ;;  %v1689_v31 = vsel %vm734_vm1, %v1687_v55, %v1688_v15  ;;  %v1440_v22 = vshrl.u32 %v3403_v28, 16 }
  0xab   : > { %1375 = vrot.lane.b32.xlu2 %v3331_v37, %s2894_s8  ;;  %1271 = vrot.lane.b32.xlu1 %v1237_v63, %s2895_s9  ;;  %v3407_v37 = vpack.c.b16 %v1411_v61, %v1411_v61 }
  0xac   : > { %1263 = vrot.lane.b32.xlu0 %v1225_v10, %s2895_s9 }
  0xad   : > { %v792_v3 = vpop.permute.xlu2 %791  ;;  %v723_v33 = vpop.permute.xlu1 %722  ;;  %v1495_v55 = vshll.u32 %v3407_v37, 16 }
  0xae   : > { %v3372_v36 = vsel %vm1776_vm2, %v1753_v24, %v792_v3  ;;  %v3374_v40 = vpop.permute.xlu0 %720  ;;  %v1034_v3 = vsel %vm509_vm0, %v1029_v51, %v1033_v21  ;;  %v1765_v47 = vsel %vm1743_vm3, %v3072_v34, %v723_v33  ;;  %v1442_v51 = vshll.u32 %v3403_v28, 16  ;;  %v2392_v21 = vld [vmem:[%s2979_s30 + $0x80] sm:$0x1] }
  0xaf   : > { %v1199_v34 = vrot.slane %v3218_v42, 1  ;;  %v1200_v33 = vrot.slane %v3296_v17, 1  ;;  %v952_v15 = vunpack.c.l.b16 %v2392_v21  ;;  %v1749_v21 = vsel %vm1743_vm3, %v2986_v2, %v3294_v29 }
  0xb0   : > { %v1444_v19 = vrot.slane %v1442_v51, 1 }
  0xb1   : > { %v1201_v42 = vsel %vm734_vm1, %v1199_v34, %v1200_v33  ;;  %v1084_v33 = vshrl.u32 %v3258_v54, 16 }
  0xb3   : > { %1655 = vrot.lane.b32.xlu2 %v1594_v44, %s2896_s10  ;;  %1647 = vrot.lane.b32.xlu1 %v1546_v0, %s2896_s10  ;;  %v1211_v44 = vrot.slane %v3247_v53, 1  ;;  %v3416_v0 = vpack.c.b16 %v1407_v20, %v1407_v20  ;;  %v1086_v20 = vshll.u32 %v3258_v54, 16 }
  0xb4   : > { %1383 = vrot.lane.b32.xlu0 %v3327_v9, %s2894_s8  ;;  %v1701_v9 = vsel %vm734_vm1, %v1699_v4, %v1700_v49  ;;  %v1488_v4 = vshrl.u32 %v3398_v59, 16  ;;  %v1492_v49 = vrot.slane %v1490_v38, 1 }
  0xb5   : > { %v798_v63 = vpop.permute.xlu2 %797  ;;  %v729_v18 = vpop.permute.xlu1 %728  ;;  %v1213_v5 = vsel %vm734_vm1, %v1211_v44, %v1212_v39  ;;  %v1447_v61 = vshll.u32 %v3416_v0, 16  ;;  %v1445_v44 = vor.u32 %v1444_v19, %v1440_v22  ;;  %v1676_v22 = vrot.slane %v3407_v37, 1 }
  0xb6   : > { %v3390_v10 = vsel %vm1776_vm2, %v1759_v60, %v798_v63  ;;  %v3395_v24 = vpop.permute.xlu0 %726  ;;  %v1493_v17 = vor.u32 %v1492_v49, %v1488_v4  ;;  %v1663_v19 = vrot.slane %v3403_v28, 1 }
  0xbb   : > { %1175 = vrot.lane.b32.xlu2 %v1034_v3, %s2893_s7  ;;  %1735 = vrot.lane.b32.xlu1 %v1701_v9, %s2897_s11  ;;  %v1497_v3 = vrot.slane %v1495_v55, 1  ;;  %v3440_v9 = vpack.c.b16 %v952_v15, %v952_v15  ;;  %v1757_v55 = vsel %vm1743_vm3, %v3054_v8, %v3353_v46  ;;  %v1134_v8 = vshll.u32 %v3308_v7, 16 }
  0xbc   : > { %1727 = vrot.lane.b32.xlu0 %v1689_v31, %s2897_s11  ;;  %v1771_v31 = vsel %vm1743_vm3, %v3105_v14, %v729_v18  ;;  %v1755_v46 = vsel %vm1743_vm3, %v3002_v16, %v3255_v23  ;;  %v1238_v16 = vrot.slane %v3308_v7, 1 }
  0xbd   : > { %v804_v43 = vpop.permute.xlu2 %803  ;;  %v784_v53 = vpop.permute.xlu1 %783  ;;  %v1498_v18 = vsel %vm509_vm0, %v1493_v17, %v1497_v3  ;;  %v1664_v3 = vrot.slane %v3416_v0, 1 }
  0xbe   : > { %v3424_v60 = vsel %vm1776_vm2, %v1765_v47, %v804_v43  ;;  %v1778_v63 = vsel %vm1776_vm2, %v1745_v11, %v784_v53  ;;  %v3429_v13 = vpop.permute.xlu0 %732  ;;  %v1449_v47 = vrot.slane %v1447_v61, 1  ;;  %v1751_v43 = vsel %vm1743_vm3, %v3016_v30, %v3322_v57  ;;  %v2404_v53 = vld [vmem:[%s2979_s30 + $0xb0] sm:$0x1]  ;;  %v2440_v61 = vld [vmem:[%s2979_s30 + $0x8c] sm:$0x1] }
  0xbf   : > { %v1088_v30 = vrot.slane %v1086_v20, 1  ;;  %v1091_v57 = vshll.u32 %v3440_v9, 16  ;;  %v956_v49 = vunpack.c.l.b16 %v2404_v53  ;;  %v1226_v53 = vrot.slane %v3258_v54, 1 }
  0xc0   : > { %v1450_v4 = vsel %vm509_vm0, %v1445_v44, %v1449_v47  ;;  %v1665_v44 = vsel %vm734_vm1, %v1663_v19, %v1664_v3  ;;  %v1132_v47 = vshrl.u32 %v3308_v7, 16  ;;  %v1763_v7 = vsel %vm1743_vm3, %v3087_v50, %v3374_v40 }
  0xc1   : > { %v1089_v2 = vor.u32 %v1088_v30, %v1084_v33  ;;  %v1093_v29 = vrot.slane %v1091_v57, 1  ;;  %v972_v20 = vpack.c.b16 %v956_v49, %v956_v49  ;;  %v1227_v33 = vrot.slane %v3440_v9, 1 }
  0xc3   : > { %1359 = vrot.lane.b32.xlu2 %v3403_v28, %s2894_s8  ;;  %1255 = vrot.lane.b32.xlu1 %v1213_v5, %s2895_s9  ;;  %v1675_v5 = vrot.slane %v3398_v59, 1  ;;  %v1094_v28 = vsel %vm509_vm0, %v1089_v2, %v1093_v29  ;;  %v1239_v23 = vrot.slane %v972_v20, 1  ;;  %v1761_v2 = vsel %vm1743_vm3, %v3028_v45, %v3269_v58 }
  0xc4   : > { %1247 = vrot.lane.b32.xlu0 %v1201_v42, %s2895_s9 }
  0xc5   : > { %v810_v38 = vpop.permute.xlu2 %809  ;;  %v790_v51 = vpop.permute.xlu1 %789  ;;  %v1677_v0 = vsel %vm734_vm1, %v1675_v5, %v1676_v22  ;;  %v1240_v9 = vsel %vm734_vm1, %v1238_v16, %v1239_v23  ;;  %v1228_v5 = vsel %vm734_vm1, %v1226_v53, %v1227_v33  ;;  %v2725_v22 = vld [vmem:[%s2979_s30 + $0xb4] sm:$0xff] }
  0xc6   : > { %v3450_v39 = vsel %vm1776_vm2, %v1771_v31, %v810_v38  ;;  %v1784_v11 = vsel %vm1776_vm2, %v1751_v43, %v790_v51  ;;  %v788_v14 = vpop.permute.xlu0 %787  ;;  %v1416_v38 = vunpack.c.l.b16 %v2440_v61  ;;  %v1136_v43 = vrot.slane %v1134_v8, 1 }
  0xc7   : > { %v3459_v34 = vsel %vm1776_vm2, %v1749_v21, %v788_v14  ;;  %v1139_v51 = vshll.u32 %v972_v20, 16  ;;  %v1598_v3 = vshll.u32 %v2725_v22, 16  ;;  %v1769_v20 = vsel %vm1743_vm3, %v3119_v35, %v3395_v24 }
  0xc8   : > { %v3497_v21 = vpack.c.b16 %v1416_v38, %v1416_v38  ;;  %v1767_v38 = vsel %vm1743_vm3, %v3066_v27, %v3289_v25  ;;  %v1596_v24 = vshrl.u32 %v2725_v22, 16  ;;  %v1775_v27 = vsel %vm1743_vm3, %v3138_v1, %v3429_v13 }
  0xc9   : > { %v1141_v49 = vrot.slane %v1139_v51, 1  ;;  %v1702_v25 = vrot.slane %v2725_v22, 1 }
  0xca   : > { %v1691_v33 = vrot.slane %v3497_v21, 1 }
  0xcb   : > { %1639 = vrot.lane.b32.xlu2 %v1498_v18, %s2896_s10  ;;  %1631 = vrot.lane.b32.xlu1 %v1450_v4, %s2896_s10  ;;  %v1137_v4 = vor.u32 %v1136_v43, %v1132_v47  ;;  %v2368_v47 = vld [vmem:[%s2979_s30 + $0x20] sm:$0x1] }
  0xcc   : > { %1367 = vrot.lane.b32.xlu0 %v3398_v59, %s2894_s8  ;;  %v944_v23 = vunpack.c.l.b16 %v2368_v47  ;;  %v3585_v47 = vld [vmem:[%s2979_s30 + $0x54] sm:$0xff] }
  0xcd   : > { %v896_v15 = vpop.permute.xlu2 %895  ;;  %v796_v17 = vpop.permute.xlu1 %795  ;;  %v1142_v45 = vsel %vm509_vm0, %v1137_v4, %v1141_v49  ;;  %v1038_v4 = vshll.u32 %v3244_v62, 16 }
  0xce   : > { %v3476_v42 = vsel %vm1809_vm4, %v1778_v63, %v896_v15  ;;  %v1790_v59 = vsel %vm1776_vm2, %v1757_v55, %v796_v17  ;;  %v794_v31 = vpop.permute.xlu0 %793  ;;  %v3489_v63 = vld [vmem:[%s2979_s30 + $0x84] sm:$0xff]  ;;  %v2452_v55 = vld [vmem:[%s2979_s30 + $0xbc] sm:$0x1] }
  0xcf   : > { %v3485_v37 = vsel %vm1776_vm2, %v1755_v46, %v794_v31  ;;  %v1550_v14 = vshll.u32 %v3489_v63, 16  ;;  %v1548_v50 = vshrl.u32 %v3489_v63, 16  ;;  %v1420_v58 = vunpack.c.l.b16 %v2452_v55 }
  0xd1   : > { %v1552_v40 = vrot.slane %v1550_v14, 1  ;;  %v1436_v31 = vpack.c.b16 %v1420_v58, %v1420_v58  ;;  %v1202_v58 = vrot.slane %v3231_v48, 1 }
  0xd3   : > { %1185 = vrot.lane.b32.xlu2 %v1094_v28, %s2893_s7  ;;  %1719 = vrot.lane.b32.xlu1 %v1677_v0, %s2897_s11  ;;  %v1553_v19 = vor.u32 %v1552_v40, %v1548_v50  ;;  %v2380_v28 = vld [vmem:[%s2979_s30 + $0x50] sm:$0x1]  ;;  %v1603_v16 = vshll.u32 %v1436_v31, 16  ;;  %v1703_v14 = vrot.slane %v1436_v31, 1  ;;  %v1036_v40 = vshrl.u32 %v3244_v62, 16 }
  0xd4   : > { %1711 = vrot.lane.b32.xlu0 %v1665_v44, %s2897_s11  ;;  %v948_v51 = vunpack.c.l.b16 %v2380_v28 }
  0xd5   : > { %v902_v18 = vpop.permute.xlu2 %901  ;;  %v802_v57 = vpop.permute.xlu1 %801  ;;  %v1605_v13 = vrot.slane %v1603_v16, 1  ;;  %v1704_v50 = vsel %vm734_vm1, %v1702_v25, %v1703_v14  ;;  %v1502_v25 = vshll.u32 %v3585_v47, 16  ;;  %v1214_v14 = vrot.slane %v3244_v62, 1 }
  0xd6   : > { %v3507_v30 = vsel %vm1809_vm4, %v1784_v11, %v902_v18  ;;  %v1796_v29 = vsel %vm1776_vm2, %v1763_v7, %v802_v57  ;;  %v800_v54 = vpop.permute.xlu0 %799  ;;  %v1555_v11 = vshll.u32 %v3497_v21, 16  ;;  %v1690_v18 = vrot.slane %v3489_v63, 1 }
  0xd7   : > { %v3516_v15 = vsel %vm1776_vm2, %v1761_v2, %v800_v54  ;;  %v3553_v57 = vpack.c.b16 %v948_v51, %v948_v51  ;;  %v960_v2 = vpack.c.b16 %v944_v23, %v944_v23  ;;  %v990_v54 = vshll.u32 %v3231_v48, 16  ;;  %v2713_v23 = vld [vmem:[%s2979_s30 + $0x24] sm:$0xff] }
  0xd8   : > { %v1557_v61 = vrot.slane %v1555_v11, 1  ;;  %v1040_v11 = vrot.slane %v1038_v4, 1 }
  0xda   : > { %v1558_v35 = vsel %vm509_vm0, %v1553_v19, %v1557_v61  ;;  %v1203_v19 = vrot.slane %v960_v2, 1  ;;  %v2428_v61 = vld [vmem:[%s2979_s30 + $0x5c] sm:$0x1] }
  0xdb   : > { %1273 = vrot.lane.b32.xlu2 %v1240_v9, %s2895_s9  ;;  %1265 = vrot.lane.b32.xlu1 %v1228_v5, %s2895_s9  ;;  %v1043_v5 = vshll.u32 %v3553_v57, 16 }
  0xdc   : > { %1193 = vrot.lane.b32.xlu0 %v1142_v45, %s2893_s7  ;;  %v995_v45 = vshll.u32 %v960_v2, 16 }
  0xdd   : > { %v908_v17 = vpop.permute.xlu2 %907  ;;  %v808_v46 = vpop.permute.xlu1 %807 }
  0xde   : > { %v3530_v8 = vsel %vm1809_vm4, %v1790_v59, %v908_v17  ;;  %v3537_v0 = vsel %vm1776_vm2, %v1769_v20, %v808_v46  ;;  %v806_v44 = vpop.permute.xlu0 %805  ;;  %v1600_v59 = vrot.slane %v1598_v3, 1  ;;  %v1041_v3 = vor.u32 %v1040_v11, %v1036_v40 }
  0xdf   : > { %v3541_v43 = vsel %vm1776_vm2, %v1767_v38, %v806_v44  ;;  %v1045_v20 = vrot.slane %v1043_v5, 1  ;;  %v997_v28 = vrot.slane %v995_v45, 1  ;;  %v1452_v40 = vshrl.u32 %v2713_v23, 16 }
  0xe0   : > { %v1601_v7 = vor.u32 %v1600_v59, %v1596_v24  ;;  %v1204_v59 = vsel %vm734_vm1, %v1202_v58, %v1203_v19 }
  0xe1   : > { %v1046_v51 = vsel %vm509_vm0, %v1041_v3, %v1045_v20 }
  0xe3   : > { %1649 = vrot.lane.b32.xlu2 %v1558_v35, %s2896_s10  ;;  %1385 = vrot.lane.b32.xlu1 %v2725_v22, %s2894_s8  ;;  %v1606_v22 = vsel %vm509_vm0, %v1601_v7, %v1605_v13  ;;  %v1412_v35 = vunpack.c.l.b16 %v2428_v61  ;;  %v1215_v7 = vrot.slane %v3553_v57, 1  ;;  %v2395_v13 = vld [vmem:[%s2979_s30 + $0x8c] sm:$0x1]  ;;  %v1098_v61 = vshll.u32 %v3279_v6, 16 }
  0xe4   : > { %1377 = vrot.lane.b32.xlu0 %v3489_v63, %s2894_s8  ;;  %v1773_v63 = vsel %vm1743_vm3, %v3093_v56, %v3319_v41  ;;  %v988_v56 = vshrl.u32 %v3231_v48, 16  ;;  %v992_v41 = vrot.slane %v990_v54, 1  ;;  %v2416_v48 = vld [vmem:[%s2979_s30 + $0x2c] sm:$0x1] }
  0xe5   : > { %v914_v53 = vpop.permute.xlu2 %913  ;;  %v814_v1 = vpop.permute.xlu1 %813  ;;  %v1216_v57 = vsel %vm734_vm1, %v1214_v14, %v1215_v7 }
  0xe6   : > { %v3557_v49 = vsel %vm1809_vm4, %v1796_v29, %v914_v53  ;;  %v1808_v9 = vsel %vm1776_vm2, %v1775_v27, %v814_v1  ;;  %v812_v21 = vpop.permute.xlu0 %811  ;;  %v1692_v29 = vsel %vm734_vm1, %v1690_v18, %v1691_v33  ;;  %v993_v31 = vor.u32 %v992_v41, %v988_v56  ;;  %v2407_v18 = vld [vmem:[%s2979_s30 + $0xbc] sm:$0x1] }
  0xe7   : > { %v3565_v55 = vsel %vm1776_vm2, %v1773_v63, %v812_v21  ;;  %v3597_v27 = vpack.c.b16 %v1412_v35, %v1412_v35  ;;  %v1454_v1 = vshll.u32 %v2713_v23, 16  ;;  %v1500_v63 = vshrl.u32 %v3585_v47, 16 }
  0xe8   : > { %v998_v16 = vsel %vm509_vm0, %v993_v31, %v997_v28  ;;  %v1504_v21 = vrot.slane %v1502_v25, 1  ;;  %v1144_v35 = vshrl.u32 %v3303_v26, 16 }
  0xe9   : > { %v1507_v62 = vshll.u32 %v3597_v27, 16  ;;  %v1456_v11 = vrot.slane %v1454_v1, 1 }
  0xea   : > { %v1505_v56 = vor.u32 %v1504_v21, %v1500_v63  ;;  %v1678_v21 = vrot.slane %v3585_v47, 1 }
  0xeb   : > { %1737 = vrot.lane.b32.xlu2 %v1704_v50, %s2897_s11  ;;  %1729 = vrot.lane.b32.xlu1 %v1692_v29, %s2897_s11  ;;  %v957_v50 = vunpack.c.l.b16 %v2407_v18  ;;  %v953_v29 = vunpack.c.l.b16 %v2395_v13  ;;  %v1509_v41 = vrot.slane %v1507_v62, 1  ;;  %v1457_v20 = vor.u32 %v1456_v11, %v1452_v40  ;;  %v2455_v13 = vld [vmem:[%s2979_s30 + $0xc8] sm:$0x1] }
  0xec   : > { %1657 = vrot.lane.b32.xlu0 %v1606_v22, %s2896_s10  ;;  %v1679_v62 = vrot.slane %v3597_v27, 1  ;;  %v2729_v27 = vld [vmem:[%s4117_s1 + $0x8] sm:$0xff] }
  0xed   : > { %v3578_v17 = vpop.permute.xlu2 %919  ;;  %v900_v46 = vpop.permute.xlu1 %899  ;;  %v3623_v45 = vpack.c.b16 %v957_v50, %v957_v50  ;;  %v3629_v19 = vpack.c.b16 %v953_v29, %v953_v29  ;;  %v2443_v50 = vld [vmem:[%s2979_s30 + $0x98] sm:$0x1] }
  0xee   : > { %v3582_v38 = vsel %vm1809_vm4, %v3459_v34, %v900_v46  ;;  %v898_v44 = vpop.permute.xlu0 %897  ;;  %v1408_v34 = vunpack.c.l.b16 %v2416_v48 }
  0xef   : > { %v3590_v24 = vsel %vm1809_vm4, %v3349_v12, %v898_v44  ;;  %v1510_v44 = vsel %vm509_vm0, %v1505_v56, %v1509_v41  ;;  %v1103_v25 = vshll.u32 %v3629_v19, 16  ;;  %v1680_v56 = vsel %vm734_vm1, %v1678_v21, %v1679_v62  ;;  %v2383_v62 = vld [vmem:[%s2979_s30 + $0x5c] sm:$0x1] }
  0xf0   : > { %v1424_v4 = vpack.c.b16 %v1408_v34, %v1408_v34  ;;  %v1100_v34 = vrot.slane %v1098_v61, 1 }
  0xf1   : > { %v1105_v1 = vrot.slane %v1103_v25, 1 }
  0xf2   : > { %v1459_v5 = vshll.u32 %v1424_v4, 16  ;;  %v1667_v22 = vrot.slane %v1424_v4, 1 }
  0xf3   : > { %1249 = vrot.lane.b32.xlu2 %v1204_v59, %s2895_s9  ;;  %1177 = vrot.lane.b32.xlu1 %v1046_v51, %s2893_s7  ;;  %v1151_v51 = vshll.u32 %v3623_v45, 16 }
  0xf4   : > { %1169 = vrot.lane.b32.xlu0 %v998_v16, %s2893_s7  ;;  %v1461_v46 = vrot.slane %v1459_v5, 1  ;;  %v2011_v16 = vld [vmem:[%s4117_s1 + $0x10] sm:$0x3]  ;;  %v3667_v5 = vld [vmem:[%s2979_s30 + $0xc0] sm:$0xff] }
  0xf5   : > { %v926_v12 = vpop.permute.xlu2 %925  ;;  %v906_v33 = vpop.permute.xlu1 %905  ;;  %v1610_v41 = vshll.u32 %v3667_v5, 16 }
  0xf6   : > { %v3605_v53 = vsel %vm1809_vm4, %v1808_v9, %v926_v12  ;;  %v3611_v2 = vsel %vm1809_vm4, %v3485_v37, %v906_v33  ;;  %v904_v54 = vpop.permute.xlu0 %903  ;;  %v1666_v37 = vrot.slane %v2713_v23, 1  ;;  %v2025_v12 = vunpack.c.l.b16 %v2011_v16 }
  0xf7   : > { %v3617_v9 = vsel %vm1809_vm4, %v3372_v36, %v904_v54  ;;  %v1146_v36 = vshll.u32 %v3303_v26, 16  ;;  %v1462_v14 = vsel %vm509_vm0, %v1457_v20, %v1461_v46  ;;  %v1153_v33 = vrot.slane %v1151_v51, 1 }
  0xf8   : > { %v1668_v28 = vsel %vm734_vm1, %v1666_v37, %v1667_v22  ;;  %v1417_v22 = vunpack.c.l.b16 %v2443_v50  ;;  %v1241_v20 = vrot.slane %v3303_v26, 1  ;;  %v1242_v46 = vrot.slane %v3623_v45, 1 }
  0xf9   : > { %v1148_v59 = vrot.slane %v1146_v36, 1  ;;  %v2728_v36 = vld [vmem:[%s4117_s1] sm:$0xff]  ;;  %v1230_v51 = vrot.slane %v3629_v19, 1  ;;  %v1608_v26 = vshrl.u32 %v3667_v5, 16 }
  0xfa   : > { %v1243_v19 = vsel %vm734_vm1, %v1241_v20, %v1242_v46  ;;  %v2419_v46 = vld [vmem:[%s2979_s30 + $0x38] sm:$0x1] }
  0xfb   : > { %1369 = vrot.lane.b32.xlu2 %v3585_v47, %s2894_s8  ;;  %1361 = vrot.lane.b32.xlu1 %v2713_v23, %s2894_s8  ;;  %v1096_v23 = vshrl.u32 %v3279_v6, 16  ;;  %v1149_v18 = vor.u32 %v1148_v59, %v1144_v35  ;;  %v1421_v47 = vunpack.c.l.b16 %v2455_v13  ;;  %v1229_v59 = vrot.slane %v3279_v6, 1 }
  0xfc   : > { %1257 = vrot.lane.b32.xlu0 %v1216_v57, %s2895_s9 }
  0xfd   : > { %v3627_v58 = vpop.permute.xlu2 %1191  ;;  %v3632_v3 = vpop.permute.xlu1 %911  ;;  %v1101_v4 = vor.u32 %v1100_v34, %v1096_v23  ;;  %v1154_v11 = vsel %vm509_vm0, %v1149_v18, %v1153_v33  ;;  %v1612_v34 = vrot.slane %v1610_v41, 1 }
  0xfe   : > { %v910_v31 = vpop.permute.xlu0 %909 }
  0xff   : > { %v3638_v48 = vsel %vm1809_vm4, %v3390_v10, %v910_v31  ;;  %v2028_v10 = vpack.c.b16 %v2025_v12, %v2025_v12  ;;  %v1106_v37 = vsel %vm509_vm0, %v1101_v4, %v1105_v1  ;;  %v1433_v31 = vpack.c.b16 %v1417_v22, %v1417_v22 }
 0x100   : > { %v1002_v4 = vshll.u32 %v3228_v32, 16 }
 0x101   : > { %v2066_v54 = vsel %vm2064_vm5, %v2028_v10, 0  ;;  %v1231_v10 = vsel %vm734_vm1, %v1229_v59, %v1230_v51  ;;  %v1050_v51 = vshll.u32 %v3241_v52, 16 }
 0x102   : > { %2732 = vmatpush.bf16.msra.mxu2 %v2066_v54  ;;  %2733 = vmatpush.bf16.msra.mxu3 %v2066_v54 }
 0x103   : > { %1713 = vrot.lane.b32.xlu2 %v1668_v28, %s2897_s11  ;;  %1641 = vrot.lane.b32.xlu1 %v1510_v44, %s2896_s10  ;;  %v2371_v44 = vld [vmem:[%s2979_s30 + $0x2c] sm:$0x1] }
 0x104   : > { %1633 = vrot.lane.b32.xlu0 %v1462_v14, %s2896_s10  ;;  %2073 = vmatpush.bf16.msra.mxu0 %v2066_v54  ;;  %v945_v6 = vunpack.c.l.b16 %v2371_v44  ;;  %v1567_v14 = vshll.u32 %v1433_v31, 16 }
 0x105   : > { %v3651_v7 = vpop.permute.xlu2 %1375  ;;  %v918_v63 = vpop.permute.xlu1 %917  ;;  %2731 = vmatpush.bf16.msra.mxu1 %v2066_v54 }
 0x106   : > { %v3659_v29 = vsel %vm1809_vm4, %v3541_v43, %v918_v63  ;;  %v916_v57 = vpop.permute.xlu0 %915  ;;  %v3674_v43 = vld [vmem:[%s2979_s30 + $0x90] sm:$0xff]  ;;  %2735 = vmatpush.bf16.msra.mxu2 %v2729_v27  ;;  %2736 = vmatpush.bf16.msra.mxu3 %v2729_v27  ;;  %v3710_v33 = vpack.c.b16 %v945_v6, %v945_v6  ;;  %v1569_v54 = vrot.slane %v1567_v14, 1 }
 0x107   : > { %v3663_v40 = vsel %vm1809_vm4, %v3424_v60, %v916_v57  ;;  %v3679_v60 = vpack.c.b16 %v1421_v47, %v1421_v47  ;;  %v1562_v28 = vshll.u32 %v3674_v43, 16  ;;  %v1560_v12 = vshrl.u32 %v3674_v43, 16 }
 0x108   : > { %2074 = vmatpush.bf16.msra.mxu0 %v2729_v27  ;;  %v1000_v57 = vshrl.u32 %v3228_v32, 16  ;;  %v1007_v47 = vshll.u32 %v3710_v33, 16  ;;  %v1693_v44 = vrot.slane %v3674_v43, 1 }
 0x109   : > { %2734 = vmatpush.bf16.msra.mxu1 %v2729_v27  ;;  %v1615_v25 = vshll.u32 %v3679_v60, 16  ;;  %v1706_v20 = vrot.slane %v3679_v60, 1  ;;  %v1048_v60 = vshrl.u32 %v3241_v52, 16 }
 0x10a   : > { %2738 = vmatpush.bf16.msra.mxu2 %v2728_v36  ;;  %2739 = vmatpush.bf16.msra.mxu3 %v2728_v36 }
 0x10b   : > { %1195 = vrot.lane.b32.xlu2 %v1154_v11, %s2893_s7  ;;  %1187 = vrot.lane.b32.xlu1 %v1106_v37, %s2893_s7  ;;  %v1617_v18 = vrot.slane %v1615_v25, 1  ;;  %v1004_v11 = vrot.slane %v1002_v4, 1  ;;  %v949_v37 = vunpack.c.l.b16 %v2383_v62  ;;  %v1409_v25 = vunpack.c.l.b16 %v2419_v46 }
 0x10c   : > { %1721 = vrot.lane.b32.xlu0 %v1680_v56, %s2897_s11  ;;  %2075 = vmatpush.bf16.msra.mxu0 %v2728_v36  ;;  %v1009_v56 = vrot.slane %v1007_v47, 1 }
 0x10d   : > { %v3686_v61 = vpop.permute.xlu2 %1655  ;;  %v924_v35 = vpop.permute.xlu1 %923  ;;  %2737 = vmatpush.bf16.msra.mxu1 %v2728_v36  ;;  %v1005_v22 = vor.u32 %v1004_v11, %v1000_v57  ;;  %v1705_v36 = vrot.slane %v3667_v5, 1  ;;  %v965_v59 = vpack.c.b16 %v949_v37, %v949_v37 }
 0x10e   : > { %v3696_v16 = vsel %vm1809_vm4, %v3565_v55, %v924_v35  ;;  %v922_v23 = vpop.permute.xlu0 %921  ;;  %v1564_v55 = vrot.slane %v1562_v28, 1  ;;  %v1694_v35 = vrot.slane %v1433_v31, 1 }
 0x10f   : > { %v3701_v45 = vsel %vm1809_vm4, %v3450_v39, %v922_v23  ;;  %v1613_v39 = vor.u32 %v1612_v34, %v1608_v26  ;;  %v1010_v26 = vsel %vm509_vm0, %v1005_v22, %v1009_v56  ;;  %v3736_v34 = vld [vmem:[%s2979_s30 + $0x30] sm:$0xff]  ;;  %v1707_v6 = vsel %vm734_vm1, %v1705_v36, %v1706_v20  ;;  %v2718_v56 = vld [vmem:[%s2979_s30 + $0x60] sm:$0xff] }
 0x110   : > { %v1565_v13 = vor.u32 %v1564_v55, %v1560_v12  ;;  %v1055_v12 = vshll.u32 %v965_v59, 16  ;;  %v1218_v31 = vrot.slane %v965_v59, 1  ;;  %v3744_v55 = vpack.c.b16 %v1409_v25, %v1409_v25 }
 0x111   : > { %v1618_v50 = vsel %vm509_vm0, %v1613_v39, %v1617_v18  ;;  %v1466_v14 = vshll.u32 %v3736_v34, 16  ;;  %v1205_v39 = vrot.slane %v3228_v32, 1  ;;  %v1206_v18 = vrot.slane %v3710_v33, 1 }
 0x112   : > { %v1570_v27 = vsel %vm509_vm0, %v1565_v13, %v1569_v54  ;;  %v1057_v54 = vrot.slane %v1055_v12, 1  ;;  %v1464_v11 = vshrl.u32 %v3736_v34, 16  ;;  %v1471_v32 = vshll.u32 %v3744_v55, 16 }
 0x113   : > { %1379 = vrot.lane.b32.xlu2 %v3674_v43, %s2894_s8  ;;  %1275 = vrot.lane.b32.xlu1 %v1243_v19, %s2895_s9  ;;  %v1052_v19 = vrot.slane %v1050_v51, 1  ;;  %v1217_v43 = vrot.slane %v3241_v52, 1  ;;  %v1835_v52 = vsel %vm1809_vm4, %v3537_v0, %v3578_v17  ;;  %v1468_v47 = vrot.slane %v1466_v14, 1  ;;  %v2410_v51 = vld [vmem:[%s2979_s30 + $0xc8] sm:$0x1] }
 0x114   : > { %1267 = vrot.lane.b32.xlu0 %v1231_v10, %s2895_s9  ;;  %v1868_v33 = vsel %vm1842_vm6, %v1835_v52, %v3627_v58  ;;  %v1207_v0 = vsel %vm734_vm1, %v1205_v39, %v1206_v18  ;;  %v1514_v59 = vshll.u32 %v2718_v56, 16  ;;  %v1669_v18 = vrot.slane %v3736_v34, 1 }
 0x115   : > { %v3714_v1 = vpop.permute.xlu2 %1175  ;;  %v1184_v63 = vpop.permute.xlu1 %1183  ;;  %v1053_v13 = vor.u32 %v1052_v19, %v1048_v60  ;;  %v1219_v57 = vsel %vm734_vm1, %v1217_v43, %v1218_v31  ;;  %v1681_v31 = vrot.slane %v2718_v56, 1 }
 0x116   : > { %v3716_v21 = vpop.permute.xlu0 %1167  ;;  %v1516_v19 = vrot.slane %v1514_v59, 1  ;;  %v2458_v59 = vld [vmem:[%s2979_s30 + $0xd4] sm:$0x1] }
 0x117   : > { %v1058_v22 = vsel %vm509_vm0, %v1053_v13, %v1057_v54  ;;  %v3799_v54 = vld [vmem:[%s2979_s30 + $0xc0] sm:$0xff] }
 0x118   : > { %v1158_v52 = vshll.u32 %v3799_v54, 16 }
 0x11b   : > { %1659 = vrot.lane.b32.xlu2 %v1618_v50, %s2896_s10  ;;  %1651 = vrot.lane.b32.xlu1 %v1570_v27, %s2896_s10  ;;  %v2431_v50 = vld [vmem:[%s2979_s30 + $0x68] sm:$0x1]  ;;  %v1827_v27 = vsel %vm1809_vm4, %v3516_v15, %v3632_v3  ;;  %v1469_v15 = vor.u32 %v1468_v47, %v1464_v11  ;;  %v1473_v3 = vrot.slane %v1471_v32, 1  ;;  %v2807_v47 = vld [vmem:[%s2979_s30 + $0x90] sm:$0xff] }
 0x11c   : > { %1387 = vrot.lane.b32.xlu0 %v3667_v5, %s2894_s8  ;;  %v1695_v5 = vsel %vm734_vm1, %v1693_v44, %v1694_v35  ;;  %v1860_v17 = vsel %vm1842_vm6, %v1827_v27, %v1184_v63  ;;  %v1413_v36 = vunpack.c.l.b16 %v2431_v50  ;;  %v1110_v32 = vshll.u32 %v2807_v47, 16 }
 0x11d   : > { %v3727_v41 = vpop.permute.xlu2 %1359  ;;  %v1272_v28 = vpop.permute.xlu1 %1271  ;;  %v1474_v60 = vsel %vm509_vm0, %v1469_v15, %v1473_v3 }
 0x11e   : > { %v1264_v23 = vpop.permute.xlu0 %1263  ;;  %v1901_v37 = vsel %vm1875_vm7, %v1868_v33, %v1272_v28  ;;  %v1429_v35 = vpack.c.b16 %v1413_v36, %v1413_v36 }
 0x11f   : > { %v1893_v20 = vsel %vm1875_vm7, %v1860_v17, %v1264_v23 }
 0x120   : > { %v1926_v46 = vsel %vm1908_vm8, %v1893_v20, %v3651_v7  ;;  %v958_v7 = vunpack.c.l.b16 %v2410_v51  ;;  %v1519_v12 = vshll.u32 %v1429_v35, 16  ;;  %v1682_v14 = vrot.slane %v1429_v35, 1 }
 0x121   : > { %v1232_v20 = vrot.slane %v2807_v47, 1 }
 0x122   : > { %v3796_v13 = vpack.c.b16 %v958_v7, %v958_v7  ;;  %v1683_v27 = vsel %vm734_vm1, %v1681_v31, %v1682_v14  ;;  %v1844_v7 = vsel %vm1842_vm6, %v3476_v42, %v3716_v21  ;;  %v1244_v42 = vrot.slane %v3799_v54, 1 }
 0x123   : > { %1171 = vrot.lane.b32.xlu2 %v1010_v26, %s2893_s7  ;;  %1739 = vrot.lane.b32.xlu1 %v1707_v6, %s2897_s11  ;;  %v2398_v6 = vld [vmem:[%s2979_s30 + $0x98] sm:$0x1] }
 0x124   : > { %1731 = vrot.lane.b32.xlu0 %v1695_v5, %s2897_s11  ;;  %v954_v43 = vunpack.c.l.b16 %v2398_v6  ;;  %v1163_v17 = vshll.u32 %v3796_v13, 16  ;;  %v1245_v21 = vrot.slane %v3796_v13, 1 }
 0x125   : > { %v3748_v10 = vpop.permute.xlu2 %1639  ;;  %v1648_v4 = vpop.permute.xlu1 %1647 }
 0x126   : > { %v1384_v62 = vpop.permute.xlu0 %1383  ;;  %v1959_v23 = vsel %vm1941_vm9, %v1926_v46, %v1648_v4  ;;  %v1670_v4 = vrot.slane %v3744_v55, 1  ;;  %v970_v11 = vpack.c.b16 %v954_v43, %v954_v43  ;;  %v1160_v55 = vrot.slane %v1158_v52, 1 }
 0x127   : > { %v1934_v58 = vsel %vm1908_vm8, %v1901_v37, %v1384_v62  ;;  %v1165_v46 = vrot.slane %v1163_v17, 1 }
 0x128   : > { %v1967_v44 = vsel %vm1941_vm9, %v1934_v58, %v3686_v61  ;;  %v1512_v61 = vshrl.u32 %v2718_v56, 16  ;;  %v1115_v36 = vshll.u32 %v970_v11, 16  ;;  %v1233_v58 = vrot.slane %v970_v11, 1 }
 0x12a   : > { %v1517_v50 = vor.u32 %v1516_v19, %v1512_v61  ;;  %v1117_v35 = vrot.slane %v1115_v36, 1 }
 0x12b   : > { %1259 = vrot.lane.b32.xlu2 %v1219_v57, %s2895_s9  ;;  %1251 = vrot.lane.b32.xlu1 %v1207_v0, %s2895_s9  ;;  %v1521_v57 = vrot.slane %v1519_v12, 1  ;;  %v1671_v0 = vsel %vm734_vm1, %v1669_v18, %v1670_v4  ;;  %v2723_v12 = vld [vmem:[%s2979_s30 + $0x9c] sm:$0xff]  ;;  %v2386_v4 = vld [vmem:[%s2979_s30 + $0x68] sm:$0x1] }
 0x12c   : > { %1179 = vrot.lane.b32.xlu0 %v1058_v22, %s2893_s7  ;;  %v1108_v22 = vshrl.u32 %v2807_v47, 16  ;;  %v1574_v11 = vshll.u32 %v2723_v12, 16  ;;  %v2374_v47 = vld [vmem:[%s2979_s30 + $0x38] sm:$0x1]  ;;  %v1572_v17 = vshrl.u32 %v2723_v12, 16 }
 0x12d   : > { %v3774_v63 = vpop.permute.xlu2 %1185  ;;  %v1736_v28 = vpop.permute.xlu1 %1735  ;;  %v1522_v37 = vsel %vm509_vm0, %v1517_v50, %v1521_v57 }
 0x12e   : > { %v1728_v26 = vpop.permute.xlu0 %1727  ;;  %v2000_v25 = vsel %vm1974_vm10, %v1967_v44, %v1736_v28 }
 0x12f   : > { %v1992_v5 = vsel %vm1974_vm10, %v1959_v23, %v1728_v26  ;;  %2671 = vmatmul.msk.bf16.vlgmr.msra.gmra.mxu3 %vm2031_vm11, %v2000_v25  ;;  %v2446_v23 = vld [vmem:[%s2979_s30 + $0xa4] sm:$0x1]  ;;  %v1234_v26 = vsel %vm734_vm1, %v1232_v20, %v1233_v58  ;;  %v1852_v25 = vsel %vm1842_vm6, %v3617_v9, %v3714_v1 }
 0x130   : > { %2667 = vmatmul.msk.bf16.vlgmr.msra.gmra.mxu2 %vm2031_vm11, %v1992_v5  ;;  %v3821_v5 = vld [vmem:[%s2979_s30 + $0xcc] sm:$0xff]  ;;  %v1418_v43 = vunpack.c.l.b16 %v2446_v23  ;;  %v2808_v58 = vld [vmem:[%s2979_s30 + $0x60] sm:$0xff] }
 0x131   : > { %v1622_v18 = vshll.u32 %v3821_v5, 16 }
 0x132   : > { %v1434_v57 = vpack.c.b16 %v1418_v43, %v1418_v43 }
 0x133   : > { %1635 = vrot.lane.b32.xlu2 %v1474_v60, %s2896_s10  ;;  %1371 = vrot.lane.b32.xlu1 %v2718_v56, %s2894_s8  ;;  %v1112_v56 = vrot.slane %v1110_v32, 1  ;;  %v1422_v60 = vunpack.c.l.b16 %v2458_v59 }
 0x134   : > { %1363 = vrot.lane.b32.xlu0 %v3736_v34, %s2894_s8  ;;  %v1156_v34 = vshrl.u32 %v3799_v54, 16  ;;  %v1697_v36 = vrot.slane %v1434_v57, 1 }
 0x135   : > { %v3792_v39 = vpop.permute.xlu2 %1273  ;;  %v1256_v62 = vpop.permute.xlu1 %1255  ;;  %v1113_v44 = vor.u32 %v1112_v56, %v1108_v22  ;;  %v3838_v14 = vpack.c.b16 %v1422_v60, %v1422_v60  ;;  %v1579_v22 = vshll.u32 %v1434_v57, 16  ;;  %v1696_v56 = vrot.slane %v2723_v12, 1 }
 0x136   : > { %v1248_v33 = vpop.permute.xlu0 %1247  ;;  %v1161_v3 = vor.u32 %v1160_v55, %v1156_v34  ;;  %v1885_v61 = vsel %vm1875_vm7, %v1852_v25, %v1256_v62  ;;  %v946_v34 = vunpack.c.l.b16 %v2374_v47  ;;  %v1246_v55 = vsel %vm734_vm1, %v1244_v42, %v1245_v21 }
 0x137   : > { %v1118_v19 = vsel %vm509_vm0, %v1113_v44, %v1117_v35  ;;  %v1877_v31 = vsel %vm1875_vm7, %v1844_v7, %v1248_v33  ;;  %v3863_v35 = vld [vmem:[%s2979_s30 + $0x30] sm:$0xff]  ;;  %v1698_v60 = vsel %vm734_vm1, %v1696_v56, %v1697_v36  ;;  %v1060_v7 = vshrl.u32 %v2808_v58, 16 }
 0x138   : > { %v1166_v6 = vsel %vm509_vm0, %v1161_v3, %v1165_v46  ;;  %v1910_v52 = vsel %vm1908_vm8, %v1877_v31, %v3727_v41  ;;  %v1620_v41 = vshrl.u32 %v3821_v5, 16  ;;  %v1062_v3 = vshll.u32 %v2808_v58, 16  ;;  %v2719_v56 = vld [vmem:[%s2979_s30 + $0x6c] sm:$0xff] }
 0x139   : > { %v3860_v44 = vpack.c.b16 %v946_v34, %v946_v34  ;;  %v1014_v59 = vshll.u32 %v3863_v35, 16  ;;  %v1012_v43 = vshrl.u32 %v3863_v35, 16  ;;  %v1708_v57 = vrot.slane %v3821_v5, 1 }
 0x13b   : > { %1723 = vrot.lane.b32.xlu2 %v1683_v27, %s2897_s11  ;;  %1715 = vrot.lane.b32.xlu1 %v1671_v0, %s2897_s11  ;;  %v950_v27 = vunpack.c.l.b16 %v2386_v4  ;;  %v1624_v0 = vrot.slane %v1622_v18, 1  ;;  %v1016_v31 = vrot.slane %v1014_v59, 1 }
 0x13c   : > { %1643 = vrot.lane.b32.xlu0 %v1522_v37, %s2896_s10  ;;  %v1576_v37 = vrot.slane %v1574_v11, 1  ;;  %v1709_v11 = vrot.slane %v3838_v14, 1 }
 0x13d   : > { %v3811_v15 = vpop.permute.xlu2 %1649  ;;  %v1632_v28 = vpop.permute.xlu1 %1631  ;;  %v966_v20 = vpack.c.b16 %v950_v27, %v950_v27  ;;  %v1625_v46 = vor.u32 %v1624_v0, %v1620_v41  ;;  %v1017_v4 = vor.u32 %v1016_v31, %v1012_v43  ;;  %v1862_v27 = vsel %vm1842_vm6, %v3557_v49, %v3774_v63 }
 0x13e   : > { %v1368_v51 = vpop.permute.xlu0 %1367  ;;  %v1943_v32 = vsel %vm1941_vm9, %v1910_v52, %v1632_v28  ;;  %v1577_v23 = vor.u32 %v1576_v37, %v1572_v17 }
 0x13f   : > { %v1918_v9 = vsel %vm1908_vm8, %v1885_v61, %v1368_v51  ;;  %v1064_v61 = vrot.slane %v1062_v3, 1  ;;  %v1221_v34 = vrot.slane %v966_v20, 1  ;;  %v1209_v3 = vrot.slane %v3860_v44, 1 }
 0x140   : > { %v1951_v50 = vsel %vm1941_vm9, %v1918_v9, %v3748_v10  ;;  %v1627_v10 = vshll.u32 %v3838_v14, 16  ;;  %v1019_v9 = vshll.u32 %v3860_v44, 16  ;;  %v1710_v14 = vsel %vm734_vm1, %v1708_v57, %v1709_v11 }
 0x141   : > { %v1065_v21 = vor.u32 %v1064_v61, %v1060_v7 }
 0x142   : > { %v1629_v28 = vrot.slane %v1627_v10, 1  ;;  %v1021_v52 = vrot.slane %v1019_v9, 1  ;;  %v1220_v10 = vrot.slane %v2808_v58, 1 }
 0x143   : > { %1269 = vrot.lane.b32.xlu2 %v1234_v26, %s2895_s9  ;;  %1197 = vrot.lane.b32.xlu1 %v1166_v6, %s2893_s7  ;;  %v1581_v26 = vrot.slane %v1579_v22, 1  ;;  %v1208_v22 = vrot.slane %v3863_v35, 1 }
 0x144   : > { %1189 = vrot.lane.b32.xlu0 %v1118_v19, %s2893_s7  ;;  %v1067_v19 = vshll.u32 %v966_v20, 16  ;;  %v1022_v0 = vsel %vm509_vm0, %v1017_v4, %v1021_v52  ;;  %v1222_v58 = vsel %vm734_vm1, %v1220_v10, %v1221_v34  ;;  %v1684_v52 = vrot.slane %v2719_v56, 1 }
 0x145   : > { %v3834_v1 = vpop.permute.xlu2 %1737  ;;  %v1720_v62 = vpop.permute.xlu1 %1719  ;;  %v1582_v42 = vsel %vm509_vm0, %v1577_v23, %v1581_v26  ;;  %v1526_v23 = vshll.u32 %v2719_v56, 16  ;;  %v1210_v61 = vsel %vm734_vm1, %v1208_v22, %v1209_v3 }
 0x146   : > { %v1712_v54 = vpop.permute.xlu0 %1711  ;;  %v1984_v13 = vsel %vm1974_vm10, %v1951_v50, %v1720_v62  ;;  %v1069_v18 = vrot.slane %v1067_v19, 1  ;;  %v2422_v62 = vld [vmem:[%s2979_s30 + $0x44] sm:$0x1] }
 0x147   : > { %v1976_v33 = vsel %vm1974_vm10, %v1943_v32, %v1712_v54  ;;  %2663 = vmatmul.msk.bf16.vlgmr.msra.gmra.mxu1 %vm2031_vm11, %v1984_v13  ;;  %v3881_v54 = vld [vmem:[%s2979_s30 + $0x3c] sm:$0xff]  ;;  %v1410_v13 = vunpack.c.l.b16 %v2422_v62  ;;  %v1528_v44 = vrot.slane %v1526_v23, 1 }
 0x148   : > { %2659 = vmatmul.msk.bf16.vlgmr.msra.gmra.mxu0 %vm2031_vm11, %v1976_v33  ;;  %v1070_v32 = vsel %vm509_vm0, %v1065_v21, %v1069_v18  ;;  %v2434_v33 = vld [vmem:[%s2979_s30 + $0x74] sm:$0x1]  ;;  %v1478_v63 = vshll.u32 %v3881_v54, 16  ;;  %v1672_v57 = vrot.slane %v3881_v54, 1 }
 0x149   : > { %v1414_v37 = vunpack.c.l.b16 %v2434_v33  ;;  %v1426_v49 = vpack.c.b16 %v1410_v13, %v1410_v13 }
 0x14a   : > { %v1480_v26 = vrot.slane %v1478_v63, 1 }
 0x14b   : > { %1389 = vrot.lane.b32.xlu2 %v3821_v5, %s2894_s8  ;;  %1381 = vrot.lane.b32.xlu1 %v2723_v12, %s2894_s8  ;;  %v1630_v12 = vsel %vm509_vm0, %v1625_v46, %v1629_v28  ;;  %v1673_v11 = vrot.slane %v1426_v49, 1 }
 0x14c   : > { %1277 = vrot.lane.b32.xlu0 %v1246_v55, %s2895_s9 }
 0x14d   : > { %v1266_v51 = vpop.permute.xlu1 %1265  ;;  %v3866_v25 = vpop.permute.xlu2 %1249  ;;  %v1674_v13 = vsel %vm734_vm1, %v1672_v57, %v1673_v11 }
 0x14e   : > { %v1194_v6 = vpop.permute.xlu0 %1193  ;;  %v1895_v5 = vsel %vm1875_vm7, %v1862_v27, %v1266_v51  ;;  %v1430_v51 = vpack.c.b16 %v1414_v37, %v1414_v37 }
 0x14f   : > { %v1870_v55 = vsel %vm1842_vm6, %v3701_v45, %v1194_v6  ;;  %v1483_v6 = vshll.u32 %v1426_v49, 16 }
 0x150   : > { %v1903_v36 = vsel %vm1875_vm7, %v1870_v55, %v3792_v39  ;;  %v1476_v39 = vshrl.u32 %v3881_v54, 16  ;;  %v1531_v7 = vshll.u32 %v1430_v51, 16  ;;  %v1685_v62 = vrot.slane %v1430_v51, 1 }
 0x151   : > { %v1485_v9 = vrot.slane %v1483_v6, 1 }
 0x152   : > { %v1533_v43 = vrot.slane %v1531_v7, 1  ;;  %v1481_v31 = vor.u32 %v1480_v26, %v1476_v39 }
 0x153   : > { %1733 = vrot.lane.b32.xlu2 %v1698_v60, %s2897_s11  ;;  %1661 = vrot.lane.b32.xlu1 %v1630_v12, %s2896_s10  ;;  %v1524_v60 = vshrl.u32 %v2719_v56, 16 }
 0x154   : > { %1653 = vrot.lane.b32.xlu0 %v1582_v42, %s2896_s10  ;;  %v1486_v18 = vsel %vm509_vm0, %v1481_v31, %v1485_v9 }
 0x155   : > { %v1386_v50 = vpop.permute.xlu1 %1385  ;;  %v3887_v41 = vpop.permute.xlu2 %1369  ;;  %v1529_v12 = vor.u32 %v1528_v44, %v1524_v60 }
 0x156   : > { %v1378_v47 = vpop.permute.xlu0 %1377  ;;  %v1936_v46 = vsel %vm1908_vm8, %v1903_v36, %v1386_v50 }
 0x157   : > { %v1928_v17 = vsel %vm1908_vm8, %v1895_v5, %v1378_v47  ;;  %v1534_v21 = vsel %vm509_vm0, %v1529_v12, %v1533_v43 }
 0x158   : > { %v1961_v45 = vsel %vm1941_vm9, %v1928_v17, %v3811_v15 }
 0x15b   : > { %1181 = vrot.lane.b32.xlu2 %v1070_v32, %s2893_s7  ;;  %1173 = vrot.lane.b32.xlu1 %v1022_v0, %s2893_s7  ;;  %v1686_v32 = vsel %vm734_vm1, %v1684_v52, %v1685_v62  ;;  %s2730_s7 = sshll.u32 %s2880_s15, 8  ;;  %s2222_s15 = scalar_lea.sflag [#allocation3], %s208_s28 }
 0x15c   : > { %1741 = vrot.lane.b32.xlu0 %v1710_v14, %s2897_s11 }
 0x15d   : > { %v1730_v20 = vpop.permute.xlu1 %1729  ;;  %v1714_v19 = vpop.permute.xlu2 %1713 }
 0x15e   : > { %v1658_v28 = vpop.permute.xlu0 %1657  ;;  %v1994_v59 = vsel %vm1974_vm10, %v1961_v45, %v1730_v20 }
 0x15f   : > { %v1969_v35 = vsel %vm1941_vm9, %v1936_v46, %v1658_v28  ;;  %2668 = vmatmul.msk.bf16.gmra.mxu2 %vm2031_vm11, %v1994_v59 }
 0x160   : > { %v2002_v15 = vsel %vm1974_vm10, %v1969_v35, %v3834_v1 }
 0x161   : > { %2672 = vmatmul.msk.bf16.gmra.mxu3 %vm2031_vm11, %v2002_v15 }
 0x163   : > { %1365 = vrot.lane.b32.xlu2 %v3881_v54, %s2894_s8  ;;  %1261 = vrot.lane.b32.xlu1 %v1222_v58, %s2895_s9 }
 0x164   : > { %1253 = vrot.lane.b32.xlu0 %v1210_v61, %s2895_s9 }
 0x165   : > { %v1178_v1 = vpop.permute.xlu1 %1177  ;;  %v1196_v4 = vpop.permute.xlu2 %1195 }
 0x166   : > { %v1170_v42 = vpop.permute.xlu0 %1169  ;;  %v1854_v55 = vsel %vm1842_vm6, %v3611_v2, %v1178_v1  ;;  %v1872_v58 = vsel %vm1842_vm6, %v3696_v16, %v1196_v4 }
 0x167   : > { %v1846_v33 = vsel %vm1842_vm6, %v3590_v24, %v1170_v42 }
 0x168   : > { %v1879_v27 = vsel %vm1875_vm7, %v1846_v33, %v3866_v25 }
 0x16b   : > { %1645 = vrot.lane.b32.xlu2 %v1534_v21, %s2896_s10  ;;  %1637 = vrot.lane.b32.xlu1 %v1486_v18, %s2896_s10  ;;  %s2236_s10 = scalar_lea.hbm %s4119_s3, %s2730_s7 }
 0x16c   : > { %1373 = vrot.lane.b32.xlu0 %v2719_v56, %s2894_s8  ;;  %s2239_s18 = sshll.u32 %s2236_s10, 4  ;;  %s2240_s18 = int_to_ptr.hbm [resolvable:$true] %s2239_s18 }
 0x16d   : > { %v1362_v50 = vpop.permute.xlu1 %1361  ;;  %v1380_v5 = vpop.permute.xlu2 %1379  ;;  %s2824_s19 = sshra.s32 %s2240_s18, 4  ;;  %s2825_s19 = int_to_ptr.hbm [resolvable:$true] %s2824_s19 }
 0x16e   : > { %v1258_v47 = vpop.permute.xlu0 %1257  ;;  %v1912_v54 = vsel %vm1908_vm8, %v1879_v27, %v1362_v50  ;;  %s2826_s21 = scalar_lea.hbm %s2825_s19, 256  ;;  %p2831_p1 = scmp.lt.s32.totalorder %s2825_s19, %s4119_s3 }
 0x16f   : > { %v1887_v24 = vsel %vm1875_vm7, %v1854_v55, %v1258_v47  ;;  %p2827_p12 = scmp.ne.s32.totalorder %s2825_s19, %s2826_s21  ;;  %p2832_p2 = scmp.lt.s32.totalorder %s2830_s27, %s2826_s21 }
 0x170   : > { %v1920_v17 = vsel %vm1908_vm8, %v1887_v24, %v3887_v41 }
 0x171   : > { %p2828_p13 = pnand %p2827_p12, %p2959_p4  ;;  %p2833_p3 = por %p2832_p2, %p2831_p1 }
 0x173   : > { %1725 = vrot.lane.b32.xlu1 %v1686_v32, %s2897_s11  ;;  %p2829_p0 = pneg %p2828_p13 }
 0x174   : > { %1717 = vrot.lane.b32.xlu0 %v1674_v13, %s2897_s11  ;;  %s2237_s11 = sshll.u32 %s3984_s6, 4  ;;  %s2238_s11 = int_to_ptr.vmem [resolvable:$true] %s2237_s11 }
 0x175   : > { %v1642_v0 = vpop.permute.xlu1 %1641  ;;  %v1660_v22 = vpop.permute.xlu2 %1659  ;;  %p2834_p5 = pnand %p2833_p3, %p2829_p0 }
 0x176   : > { %v1634_v14 = vpop.permute.xlu0 %1633  ;;  %v1953_v37 = vsel %vm1941_vm9, %v1920_v17, %v1642_v0 }
 0x177   : > { %v1945_v10 = vsel %vm1941_vm9, %v1912_v54, %v1634_v14 }
 0x178   : > { %v1978_v34 = vsel %vm1974_vm10, %v1945_v10, %v1714_v19 }
 0x179   : > { %2660 = vmatmul.msk.bf16.gmra.mxu0 %vm2031_vm11, %v1978_v34 }
 0x17d   : > { %v1188_v25 = vpop.permute.xlu1 %1187  ;;  %v1172_v20 = vpop.permute.xlu2 %1171 }
 0x17e   : > { %v1722_v49 = vpop.permute.xlu0 %1721  ;;  %v1864_v41 = vsel %vm1842_vm6, %v3663_v40, %v1188_v25  ;;  %v1848_v61 = vsel %vm1842_vm6, %v3582_v38, %v1172_v20 }
 0x17f   : > { %v1986_v63 = vsel %vm1974_vm10, %v1953_v37, %v1722_v49 }
 0x180   : > { %2664 = vmatmul.msk.bf16.gmra.mxu1 %vm2031_vm11, %v1986_v63 }
 0x185   : > { %v1276_v56 = vpop.permute.xlu1 %1275  ;;  %v1260_v59 = vpop.permute.xlu2 %1259 }
 0x186   : > { %v1268_v36 = vpop.permute.xlu0 %1267  ;;  %v1905_v3 = vsel %vm1875_vm7, %v1872_v58, %v1276_v56 }
 0x187   : > { %v1897_v46 = vsel %vm1875_vm7, %v1864_v41, %v1268_v36 }
 0x188   : > { %v1930_v51 = vsel %vm1908_vm8, %v1897_v46, %v1380_v5 }
 0x18d   : > { %v1652_v2 = vpop.permute.xlu1 %1651  ;;  %v1636_v15 = vpop.permute.xlu2 %1635 }
 0x18e   : > { %v1388_v45 = vpop.permute.xlu0 %1387  ;;  %v1963_v39 = vsel %vm1941_vm9, %v1930_v51, %v1652_v2 }
 0x18f   : > { %v1938_v28 = vsel %vm1908_vm8, %v1905_v3, %v1388_v45 }
 0x190   : > { %v1971_v35 = vsel %vm1941_vm9, %v1938_v28, %v1660_v22 }
 0x195   : > { %v1740_v23 = vpop.permute.xlu1 %1739  ;;  %v1724_v19 = vpop.permute.xlu2 %1723 }
 0x196   : > { %v1732_v26 = vpop.permute.xlu0 %1731  ;;  %v2004_v16 = vsel %vm1974_vm10, %v1971_v35, %v1740_v23 }
 0x197   : > { %v1996_v6 = vsel %vm1974_vm10, %v1963_v39, %v1732_v26  ;;  %2673 = vmatmul.msk.bf16.gmra.mxu3 %vm2031_vm11, %v2004_v16 }
 0x198   : > { %2669 = vmatmul.msk.bf16.gmra.mxu2 %vm2031_vm11, %v1996_v6 }
 0x19d   : > { %v1252_v40 = vpop.permute.xlu1 %1251  ;;  %v1270_v62 = vpop.permute.xlu2 %1269 }
 0x19e   : > { %v1180_v60 = vpop.permute.xlu0 %1179  ;;  %v1881_v12 = vsel %vm1875_vm7, %v1848_v61, %v1252_v40 }
 0x19f   : > { %v1856_v43 = vsel %vm1842_vm6, %v3530_v8, %v1180_v60  ;;  %v3976_v8 = vld [vmem:[%s4118_s2] ss:$0 sm:$0xff] }
 0x1a0   : > { %v1889_v9 = vsel %vm1875_vm7, %v1856_v43, %v1260_v59 }
 0x1a5   : > { %v1372_v44 = vpop.permute.xlu1 %1371  ;;  %v1390_v14 = vpop.permute.xlu2 %1389 }
 0x1a6   : > { %v1364_v7 = vpop.permute.xlu0 %1363  ;;  %v1922_v21 = vsel %vm1908_vm8, %v1889_v9, %v1372_v44 }
 0x1a7   : > { %v1914_v31 = vsel %vm1908_vm8, %v1881_v12, %v1364_v7 }
 0x1a8   : > { %v1947_v42 = vsel %vm1941_vm9, %v1914_v31, %v1636_v15 }
 0x1ad   : > { %v1716_v1 = vpop.permute.xlu1 %1715  ;;  %v1734_v36 = vpop.permute.xlu2 %1733 }
 0x1ae   : > { %v1644_v18 = vpop.permute.xlu0 %1643  ;;  %v1980_v4 = vsel %vm1974_vm10, %v1947_v42, %v1716_v1 }
 0x1af   : > { %v1955_v38 = vsel %vm1941_vm9, %v1922_v21, %v1644_v18  ;;  %2661 = vmatmul.msk.bf16.gmra.mxu0 %vm2031_vm11, %v1980_v4 }
 0x1b0   : > { %v1988_v52 = vsel %vm1974_vm10, %v1955_v38, %v1724_v19 }
 0x1b1   : > { %2665 = vmatmul.msk.bf16.gmra.mxu1 %vm2031_vm11, %v1988_v52 }
 0x1b2   : > { %v2137_v50 = vpop.f32.mrf.mxu3 }
 0x1b3   : > { %v2117_v57 = vpop.f32.mrf.mxu2  ;;  %v2138_v11 = vadd.f32 %v3976_v8, %v2137_v50 }
 0x1b4   : > { %v2118_v47 = vadd.f32 %v3976_v8, %v2117_v57 }
 0x1b5   : > { %v2181_v32 = vmax.f32 %v2138_v11, 0.0  ;;  %v1198_v13 = vpop.permute.xlu1 %1197  ;;  %v1182_v15 = vpop.permute.xlu2 %1181 }
 0x1b6   : > { %v2173_v33 = vmax.f32 %v2118_v47, 0.0  ;;  %v1190_v27 = vpop.permute.xlu0 %1189  ;;  %v1874_v46 = vsel %vm1842_vm6, %v3605_v53, %v1198_v13  ;;  %v1858_v43 = vsel %vm1842_vm6, %v3638_v48, %v1182_v15 }
 0x1b7   : > { %2213 = vst [vmem:[%s3984_s6 + $0xc0] sm:$0xff] %v2181_v32  ;;  %v1866_v25 = vsel %vm1842_vm6, %v3659_v29, %v1190_v27 }
 0x1b8   : > { %2205 = vst [vmem:[%s3984_s6 + $0x80] sm:$0xff] %v2173_v33  ;;  %v1899_v49 = vsel %vm1875_vm7, %v1866_v25, %v1270_v62 }
 0x1ba   : > { %v2139_v0 = vpop.f32.mrf.mxu3 }
 0x1bb   : > { %v2119_v5 = vpop.f32.mrf.mxu2  ;;  %v2140_v54 = vadd.f32 %v3976_v8, %v2139_v0 }
 0x1bc   : > { %v2120_v10 = vadd.f32 %v3976_v8, %v2119_v5 }
 0x1bd   : > { %v2182_v34 = vmax.f32 %v2140_v54, 0.0  ;;  %v1382_v55 = vpop.permute.xlu1 %1381  ;;  %v1366_v61 = vpop.permute.xlu2 %1365 }
 0x1be   : > { %v2174_v24 = vmax.f32 %v2120_v10, 0.0  ;;  %v1278_v17 = vpop.permute.xlu0 %1277  ;;  %v1932_v20 = vsel %vm1908_vm8, %v1899_v49, %v1382_v55 }
 0x1bf   : > { %2214 = vst [vmem:[%s3984_s6 + $0xc8] sm:$0xff] %v2182_v34  ;;  %v1907_v28 = vsel %vm1875_vm7, %v1874_v46, %v1278_v17 }
 0x1c0   : > { %2206 = vst [vmem:[%s3984_s6 + $0x88] sm:$0xff] %v2174_v24  ;;  %v1940_v51 = vsel %vm1908_vm8, %v1907_v28, %v1390_v14 }
 0x1c4   : > { %v2097_v37 = vpop.f32.mrf.mxu1 }
 0x1c5   : > { %v2077_v63 = vpop.f32.mrf.mxu0  ;;  %v2098_v22 = vadd.f32 %v3976_v8, %v2097_v37  ;;  %v1662_v56 = vpop.permute.xlu1 %1661 }
 0x1c6   : > { %v2078_v2 = vadd.f32 %v3976_v8, %v2077_v63  ;;  %v1654_v45 = vpop.permute.xlu0 %1653  ;;  %v1973_v26 = vsel %vm1941_vm9, %v1940_v51, %v1662_v56  ;;  %v1646_v21 = vpop.permute.xlu2 %1645 }
 0x1c7   : > { %v2165_v58 = vmax.f32 %v2098_v22, 0.0  ;;  %v1965_v41 = vsel %vm1941_vm9, %v1932_v20, %v1654_v45 }
 0x1c8   : > { %v2157_v3 = vmax.f32 %v2078_v2, 0.0  ;;  %v1998_v29 = vsel %vm1974_vm10, %v1965_v41, %v1734_v36 }
 0x1c9   : > { %2197 = vst [vmem:[%s3984_s6 + $0x40] sm:$0xff] %v2165_v58  ;;  %2670 = vmatmul.msk.bf16.gmra.mxu2 %vm2031_vm11, %v1998_v29 }
 0x1ca   : > { %2189 = vst [vmem:[%s3984_s6] sm:$0xff] %v2157_v3 }
 0x1cc   : > { %v2099_v59 = vpop.f32.mrf.mxu1 }
 0x1cd   : > { %v2079_v23 = vpop.f32.mrf.mxu0  ;;  %v2100_v35 = vadd.f32 %v3976_v8, %v2099_v59  ;;  %v1174_v39 = vpop.permute.xlu1 %1173 }
 0x1ce   : > { %v2080_v16 = vadd.f32 %v3976_v8, %v2079_v23  ;;  %v1742_v53 = vpop.permute.xlu0 %1741  ;;  %v1850_v31 = vsel %vm1842_vm6, %v3507_v30, %v1174_v39 }
 0x1cf   : > { %v2166_v6 = vmax.f32 %v2100_v35, 0.0  ;;  %v2006_v40 = vsel %vm1974_vm10, %v1973_v26, %v1742_v53 }
 0x1d0   : > { %v2158_v60 = vmax.f32 %v2080_v16, 0.0  ;;  %2674 = vmatmul.msk.bf16.gmra.mxu3 %vm2031_vm11, %v2006_v40 }
 0x1d1   : > { %2198 = vst [vmem:[%s3984_s6 + $0x48] sm:$0xff] %v2166_v6 }
 0x1d2   : > { %2190 = vst [vmem:[%s3984_s6 + $0x8] sm:$0xff] %v2158_v60 }
 0x1d5   : > { %v1262_v44 = vpop.permute.xlu1 %1261 }
 0x1d6   : > { %v1254_v7 = vpop.permute.xlu0 %1253  ;;  %v1891_v9 = vsel %vm1875_vm7, %v1858_v43, %v1262_v44 }
 0x1d7   : > { %v1883_v1 = vsel %vm1875_vm7, %v1850_v31, %v1254_v7 }
 0x1d8   : > { %v1916_v52 = vsel %vm1908_vm8, %v1883_v1, %v1366_v61 }
 0x1dd   : > { %v1638_v19 = vpop.permute.xlu1 %1637 }
 0x1de   : > { %v1374_v12 = vpop.permute.xlu0 %1373  ;;  %v1949_v57 = vsel %vm1941_vm9, %v1916_v52, %v1638_v19 }
 0x1df   : > { %v1924_v42 = vsel %vm1908_vm8, %v1891_v9, %v1374_v12 }
 0x1e0   : > { %v1957_v48 = vsel %vm1941_vm9, %v1924_v42, %v1646_v21 }
 0x1e2   : > { %v2122_v18 = vpop.f32.mrf.mxu2 }
 0x1e3   : > { %v2123_v4 = vadd.f32 %v3976_v8, %v2122_v18 }
 0x1e4   : > { %v2142_v38 = vpop.f32.mrf.mxu3 }
 0x1e5   : > { %v2175_v62 = vmax.f32 %v2123_v4, 0.0  ;;  %v2143_v30 = vadd.f32 %v3976_v8, %v2142_v38  ;;  %v1726_v50 = vpop.permute.xlu1 %1725 }
 0x1e6   : > { %v1718_v11 = vpop.permute.xlu0 %1717  ;;  %v1990_v47 = vsel %vm1974_vm10, %v1957_v48, %v1726_v50 }
 0x1e7   : > { %2207 = vst [vmem:[%s3984_s6 + $0x90] sm:$0xff] %v2175_v62  ;;  %v2183_v32 = vmax.f32 %v2143_v30, 0.0  ;;  %v1982_v13 = vsel %vm1974_vm10, %v1949_v57, %v1718_v11  ;;  %2666 = vmatmul.msk.bf16.gmra.mxu1 %vm2031_vm11, %v1990_v47 }
 0x1e8   : > { %2662 = vmatmul.msk.bf16.gmra.mxu0 %vm2031_vm11, %v1982_v13 }
 0x1e9   : > { %2215 = vst [vmem:[%s3984_s6 + $0xd0] sm:$0xff] %v2183_v32 }
 0x1ea   : > { %v2124_v33 = vpop.f32.mrf.mxu2 }
 0x1eb   : > { %v2125_v27 = vadd.f32 %v3976_v8, %v2124_v33 }
 0x1ec   : > { %v2144_v0 = vpop.f32.mrf.mxu3 }
 0x1ed   : > { %v2176_v5 = vmax.f32 %v2125_v27, 0.0  ;;  %v2145_v54 = vadd.f32 %v3976_v8, %v2144_v0 }
 0x1ef   : > { %2208 = vst [vmem:[%s3984_s6 + $0x98] sm:$0xff] %v2176_v5  ;;  %v2184_v14 = vmax.f32 %v2145_v54, 0.0 }
 0x1f1   : > { %2216 = vst [vmem:[%s3984_s6 + $0xd8] sm:$0xff] %v2184_v14 }
 0x1f6   : > { %v2082_v10 = vpop.f32.mrf.mxu0 }
 0x1f7   : > { %v2083_v34 = vadd.f32 %v3976_v8, %v2082_v10 }
 0x1f9   : > { %v2159_v55 = vmax.f32 %v2083_v34, 0.0 }
 0x1fb   : > { %2191 = vst [vmem:[%s3984_s6 + $0x10] sm:$0xff] %v2159_v55 }
 0x1fd   : > { %v2102_v24 = vpop.f32.mrf.mxu1 }
 0x1fe   : > { %v2103_v17 = vadd.f32 %v3976_v8, %v2102_v24  ;;  %v2084_v25 = vpop.f32.mrf.mxu0 }
 0x1ff   : > { %v2085_v37 = vadd.f32 %v3976_v8, %v2084_v25 }
 0x200   : > { %v2167_v49 = vmax.f32 %v2103_v17, 0.0 }
 0x201   : > { %v2160_v63 = vmax.f32 %v2085_v37, 0.0 }
 0x202   : > { %2199 = vst [vmem:[%s3984_s6 + $0x50] sm:$0xff] %v2167_v49 }
 0x203   : > { %2192 = vst [vmem:[%s3984_s6 + $0x18] sm:$0xff] %v2160_v63 }
 0x205   : > { %v2104_v22 = vpop.f32.mrf.mxu1 }
 0x206   : > { %v2105_v56 = vadd.f32 %v3976_v8, %v2104_v22 }
 0x208   : > { %v2168_v36 = vmax.f32 %v2105_v56, 0.0 }
 0x20a   : > { %2200 = vst [vmem:[%s3984_s6 + $0x58] sm:$0xff] %v2168_v36 }
 0x21a   : > { %v2147_v20 = vpop.f32.mrf.mxu3 }
 0x21b   : > { %v2127_v2 = vpop.f32.mrf.mxu2  ;;  %v2148_v45 = vadd.f32 %v3976_v8, %v2147_v20 }
 0x21c   : > { %v2128_v58 = vadd.f32 %v3976_v8, %v2127_v2 }
 0x21d   : > { %v2185_v41 = vmax.f32 %v2148_v45, 0.0 }
 0x21e   : > { %v2177_v3 = vmax.f32 %v2128_v58, 0.0 }
 0x21f   : > { %2217 = vst [vmem:[%s3984_s6 + $0xe0] sm:$0xff] %v2185_v41 }
 0x220   : > { %2209 = vst [vmem:[%s3984_s6 + $0xa0] sm:$0xff] %v2177_v3 }
 0x222   : > { %v2149_v29 = vpop.f32.mrf.mxu3 }
 0x223   : > { %v2129_v46 = vpop.f32.mrf.mxu2  ;;  %v2150_v28 = vadd.f32 %v3976_v8, %v2149_v29 }
 0x224   : > { %v2130_v59 = vadd.f32 %v3976_v8, %v2129_v46 }
 0x225   : > { %v2186_v51 = vmax.f32 %v2150_v28, 0.0 }
 0x226   : > { %v2178_v23 = vmax.f32 %v2130_v59, 0.0 }
 0x227   : > { %2218 = vst [vmem:[%s3984_s6 + $0xe8] sm:$0xff] %v2186_v51 }
 0x228   : > { %2210 = vst [vmem:[%s3984_s6 + $0xa8] sm:$0xff] %v2178_v23 }
 0x22c   : > { %v2087_v35 = vpop.f32.mrf.mxu0 }
 0x22d   : > { %v2088_v39 = vadd.f32 %v3976_v8, %v2087_v35 }
 0x22e   : > { %v2107_v26 = vpop.f32.mrf.mxu1 }
 0x22f   : > { %v2161_v16 = vmax.f32 %v2088_v39, 0.0  ;;  %v2108_v53 = vadd.f32 %v3976_v8, %v2107_v26 }
 0x231   : > { %2193 = vst [vmem:[%s3984_s6 + $0x20] sm:$0xff] %v2161_v16  ;;  %v2169_v6 = vmax.f32 %v2108_v53, 0.0 }
 0x233   : > { %2201 = vst [vmem:[%s3984_s6 + $0x60] sm:$0xff] %v2169_v6 }
 0x234   : > { %v2089_v40 = vpop.f32.mrf.mxu0 }
 0x235   : > { %v2090_v15 = vadd.f32 %v3976_v8, %v2089_v40 }
 0x236   : > { %v2109_v60 = vpop.f32.mrf.mxu1 }
 0x237   : > { %v2162_v44 = vmax.f32 %v2090_v15, 0.0  ;;  %v2110_v7 = vadd.f32 %v3976_v8, %v2109_v60 }
 0x239   : > { %2194 = vst [vmem:[%s3984_s6 + $0x28] sm:$0xff] %v2162_v44  ;;  %v2170_v61 = vmax.f32 %v2110_v7, 0.0 }
 0x23b   : > { %2202 = vst [vmem:[%s3984_s6 + $0x68] sm:$0xff] %v2170_v61 }
 0x24c   : > { %v2132_v19 = vpop.f32.mrf.mxu2 }
 0x24d   : > { %v2133_v12 = vadd.f32 %v3976_v8, %v2132_v19 }
 0x24f   : > { %v2179_v43 = vmax.f32 %v2133_v12, 0.0 }
 0x251   : > { %2211 = vst [vmem:[%s3984_s6 + $0xb0] sm:$0xff] %v2179_v43 }
 0x253   : > { %v2152_v31 = vpop.f32.mrf.mxu3 }
 0x254   : > { %v2153_v9 = vadd.f32 %v3976_v8, %v2152_v31  ;;  %v2134_v1 = vpop.f32.mrf.mxu2 }
 0x255   : > { %v2135_v42 = vadd.f32 %v3976_v8, %v2134_v1 }
 0x256   : > { %v2187_v21 = vmax.f32 %v2153_v9, 0.0 }
 0x257   : > { %v2180_v18 = vmax.f32 %v2135_v42, 0.0 }
 0x258   : > { %2219 = vst [vmem:[%s3984_s6 + $0xf0] sm:$0xff] %v2187_v21 }
 0x259   : > { %2212 = vst [vmem:[%s3984_s6 + $0xb8] sm:$0xff] %v2180_v18 }
 0x25b   : > { %v2154_v4 = vpop.f32.mrf.mxu3 }
 0x25c   : > { %v2155_v38 = vadd.f32 %v3976_v8, %v2154_v4 }
 0x25e   : > { %v2188_v52 = vmax.f32 %v2155_v38, 0.0 }
 0x260   : > { %2220 = vst [vmem:[%s3984_s6 + $0xf8] sm:$0xff] %v2188_v52 }
 0x264   : > { %v2112_v48 = vpop.f32.mrf.mxu1 }
 0x265   : > { %v2092_v62 = vpop.f32.mrf.mxu0  ;;  %v2113_v30 = vadd.f32 %v3976_v8, %v2112_v48 }
 0x266   : > { %v2093_v50 = vadd.f32 %v3976_v8, %v2092_v62 }
 0x267   : > { %v2171_v57 = vmax.f32 %v2113_v30, 0.0 }
 0x268   : > { %v2163_v11 = vmax.f32 %v2093_v50, 0.0 }
 0x269   : > { %2203 = vst [vmem:[%s3984_s6 + $0x70] sm:$0xff] %v2171_v57 }
 0x26a   : > { %2195 = vst [vmem:[%s3984_s6 + $0x30] sm:$0xff] %v2163_v11 }
 0x26c   : > { %v2114_v47 = vpop.f32.mrf.mxu1 }
 0x26d   : > { %v2094_v32 = vpop.f32.mrf.mxu0  ;;  %v2115_v13 = vadd.f32 %v3976_v8, %v2114_v47 }
 0x26e   : > { %v2095_v33 = vadd.f32 %v3976_v8, %v2094_v32 }
 0x26f   : > { %v2172_v27 = vmax.f32 %v2115_v13, 0.0 }
 0x270   : > { %v2164_v0 = vmax.f32 %v2095_v33, 0.0 }
 0x271   : > { %2204 = vst [vmem:[%s3984_s6 + $0x78] sm:$0xff] %v2172_v27 }
 0x272   : > { %2196 = vst [vmem:[%s3984_s6 + $0x38] sm:$0xff] %v2164_v0 }
 0x273   : > { %2837 = shalt.err (!%p2834_p5)
}
 0x274   : > { %s2898_s28 = smov 128  }
 0x275   : > { %2741 = dma.vmem_to_hbm [thread:$0]  (%p2959_p4), %s2238_s11, 4096, %s2240_s18, %s2222_s15, %s2898_s28, %s2898_s28, %s2891_s5  }
 0x276 PF: > { %p2747_p6 = scmp.ge.s32.totalorder %s2888_s17, 2  ;;  %s2254_s4 = sand.u32 1, %s2868_s12  }
 0x277   : > { %s2255_s6 = scalar_lea.sflag [#allocation3], %s2254_s4 }
 0x278   : > { %p2744_p7 = pnand %p2747_p6, %p2966_p8 }
 0x27a   : > { %p2745_p9 = pneg %p2744_p7 }
 0x27c   : > { %2863 = dma.done.wait (%p2745_p9), %s2255_s6, 4096  }
 0x27d   : > { %2865 = vsyncadd (%p2745_p9), %s2255_s6, 4294963200  ;;  %s16_s17 = sadd.s32 1, %s2888_s17   ;;  %s4122_s12 = smov %s2872_s13 }
 0x27e   : > { %p13_p10 = scmp.ge.s32.totalorder %s16_s17, 4   ;;  %s4123_s13 = smov %s2876_s14 }
 0x27f   : > { %s4124_s14 = smov %s2972_s25  ;;  %s4125_s15 = smov %s2884_s16 }
 0x280   : > { %s4126_s16 = smov %s4128_s20  ;;  %15 = sbr.rel (!%p13_p10) target bundleno = 4 (0x4), region = 76 }
 0x285   :  { %2261 = vsyncpa [#allocation3], 1 }
 0x286   :  { %2263 = vsyncpa [#allocation3 + $0x1], 1 }

</bundles_post_ra>
